<compile_context>
chip_gen: v6e
topology: v6e:2x2x1
jax: 0.10.0
libtpu: 0.0.40
codegen_flags: <defaults>
</compile_context>

<pallas_src>
import functools

import jax
import jax.numpy as jnp
from jax import lax
from jax.experimental import pallas as pl
from jax.experimental.pallas import tpu as pltpu


def _full_spec(shape):
    nd = len(shape)
    return pl.BlockSpec(shape, lambda i, _nd=nd: (0,) * _nd)


# ----------------------------- Fused conv + biLSTM + fc kernel -----------------------------
def slot_tagger_kernel(x_ref, mask_ref, wproj_ref, bgate_ref, whf_ref, whb_ref,
                       wfc_ref, bfc_ref, out_ref, gin_ref, hout_ref, *, T, B, H):
    G = 4 * H

    # ---- Prologue: ONE fat im2col matmul (conv + both directions' input projection folded in).
    gin = jnp.dot(x_ref[...], wproj_ref[...],
                  preferred_element_type=jnp.float32) + bgate_ref[...]       # (T*B, 8H)
    # One-time re-layout into a time-leading scratch so the recurrent loop gets tile-clean
    # leading-axis loads (t*B with small B is never 8-sublane aligned).  Off the serial chain.
    for t in range(T):
        gin_ref[t] = gin[t * B:(t + 1) * B, :]

    def step(t, carry):
        h, c = carry                                   # (2B, H): rows [0,B)=fwd, [B,2B)=bwd
        tb = T - 1 - t
        # Two small recurrent matmuls (un-fused W_hh): no per-step lane concat and half the
        # resident weight vregs of a block-diagonal (2H, 8H) weight.
        grec_f = jnp.dot(h[:B], whf_ref[...], preferred_element_type=jnp.float32)   # (B, 4H)
        grec_b = jnp.dot(h[B:], whb_ref[...], preferred_element_type=jnp.float32)   # (B, 4H)
        gin_f = gin_ref[t, :, 0:G]                     # vreg-aligned 128-lane slices
        gin_b = gin_ref[tb, :, G:2 * G]
        gates = jnp.concatenate([gin_f + grec_f, gin_b + grec_b], axis=0)    # (2B, 4H)

        # One LSTM cell for both directions (sublane-stacked): 5 EUP pushes/step, not 10.
        i = jax.nn.sigmoid(gates[:, 0 * H:1 * H])
        f = jax.nn.sigmoid(gates[:, 1 * H:2 * H])
        g = jnp.tanh(gates[:, 2 * H:3 * H])
        o = jax.nn.sigmoid(gates[:, 3 * H:4 * H])
        c_new = f * c + i * g
        h_new = o * jnp.tanh(c_new)

        m = mask_ref[t]                                # (2B, 1) precomputed validity {0,1}
        keep = m > 0.0
        out_h = h_new * m                              # padded outputs are exactly zero
        # Two compact stores/step into the combined (T*B, 2H) hidden scratch.
        hout_ref[pl.ds(t * B, B), 0:H] = out_h[:B, :]          # fwd h at time t
        hout_ref[pl.ds(tb * B, B), H:2 * H] = out_h[B:, :]     # bwd h at time tb
        return jnp.where(keep, h_new, h), jnp.where(keep, c_new, c)

    z = jnp.zeros((2 * B, H), jnp.float32)
    # Full unroll only for small static T; bounded unroll otherwise (code size / vreg pressure).
    lax.fori_loop(0, T, step, (z, z), unroll=(True if T <= 32 else 8))

    # ---- Epilogue: ONE fused classifier matmul, fully lane-dense (T*B, 128) store.
    out_ref[...] = (jnp.dot(hout_ref[...], wfc_ref[...], preferred_element_type=jnp.float32)
                    + bfc_ref[...])


# ----------------------------- Wrapper (param fold + single pallas_call) -----------------------------
@functools.partial(jax.jit, static_argnames=("hidden_size", "kernel_size"))
def slot_tagger_forward(tokens, lengths, params, *, hidden_size, kernel_size):
    p = params
    H = hidden_size
    K = kernel_size
    B, T = tokens.shape
    E = p["emb"].shape[1]
    NC = p["wfc_f"].shape[1]
    NCp = ((NC + 127) // 128) * 128                     # lane-dense logits width

    # Glue: embedding gather (time-major) + 'same' padding + im2col flatten to (T*B, K*E).
    pad = (K - 1) // 2
    emb_tme = jnp.take(p["emb"], tokens.T, axis=0)                           # (T, B, E)
    x_pad = jnp.pad(emb_tme, ((pad, pad), (0, 0), (0, 0)))                   # (T+K-1, B, E)
    x_im2col = jnp.concatenate([x_pad[k:k + T] for k in range(K)], axis=-1)  # (T, B, K*E)
    x_flat = x_im2col.reshape(T * B, K * E)

    # Fold conv into the (fwd|bwd) gate-input projection; stack taps -> one (K*E, 8H) weight.
    w_i = jnp.concatenate([p["wif"], p["wib"]], axis=1)                      # (C, 8H)
    w_proj = jnp.einsum("kec,cg->keg", p["conv_w"], w_i).reshape(K * E, 8 * H)
    b_gate = p["conv_b"] @ w_i + jnp.concatenate([p["bf"], p["bb"]], axis=1)  # (1, 8H)

    # Fused classifier weight (fwd rows | bwd rows), zero-padded to 128 output lanes.
    w_fc = jnp.pad(jnp.concatenate([p["wfc_f"], p["wfc_b"]], axis=0),
                   ((0, 0), (0, NCp - NC)))                                  # (2H, NCp)
    b_fc = jnp.pad(p["bfc"], ((0, 0), (0, NCp - NC)))                        # (1, NCp)

    # Precomputed per-step validity masks: fwd stacked over bwd along sublanes -> (T, 2B, 1).
    t_idx = jnp.arange(T, dtype=jnp.int32)[:, None]                          # (T, 1)
    lens = lengths.astype(jnp.int32)[None, :]                                # (1, B)
    m_f = (t_idx < lens).astype(jnp.float32)                                 # (T, B)
    m_b = ((T - 1 - t_idx) < lens).astype(jnp.float32)                       # (T, B)
    mask = jnp.concatenate([m_f, m_b], axis=1)[:, :, None]                   # (T, 2B, 1)

    kernel = functools.partial(slot_tagger_kernel, T=T, B=B, H=H)
    inputs = (x_flat, mask, w_proj, b_gate, p["whf"], p["whb"], w_fc, b_fc)
    out_flat = pl.pallas_call(
        kernel,
        out_shape=jax.ShapeDtypeStruct((T * B, NCp), jnp.float32),
        grid=(1,),
        in_specs=[_full_spec(x.shape) for x in inputs],
        out_specs=_full_spec((T * B, NCp)),
        scratch_shapes=[
            pltpu.VMEM((T, B, 8 * H), jnp.float32),     # precomputed gate inputs, time-leading
            pltpu.VMEM((T * B, 2 * H), jnp.float32),    # fwd|bwd hidden outputs for the fused fc
        ],
        compiler_params=pltpu.CompilerParams(
            dimension_semantics=("arbitrary",),
            vmem_limit_bytes=32 * 1024 * 1024),
    )(*inputs)
    # (T*B, NCp) lane-dense kernel output -> (B, T, num_class): tiny XLA-side relayout.
    return out_flat.reshape(T, B, NCp).transpose(1, 0, 2)[:, :, :NC]


# ----------------------------- Pure-JAX reference -----------------------------
def reference_forward(tokens, lengths, p, hidden_size, kernel_size):
    H = hidden_size
    B, T = tokens.shape
    embedded = jnp.take(p["emb"], tokens, axis=0)
    pad = (kernel_size - 1) // 2
    x_pad = jnp.pad(embedded, ((0, 0), (pad, pad), (0, 0)))
    K = kernel_size
    conv = sum(jnp.einsum("bte,ec->btc", x_pad[:, k:k + T, :], p["conv_w"][k]) for k in range(K))
    conv = conv + p["conv_b"][None]
    x = jnp.transpose(conv, (1, 0, 2))
    mask = (jnp.arange(T)[:, None] < lengths[None, :]).astype(jnp.float32)[..., None]

    def run_dir(xs, ms, wi, wh, b):
        def step(carry, inp):
            h, c = carry
            xt, mt = inp
            gates = xt @ wi + h @ wh + b
            i = jax.nn.sigmoid(gates[:, :H]); f = jax.nn.sigmoid(gates[:, H:2 * H])
            g = jnp.tanh(gates[:, 2 * H:3 * H]); o = jax.nn.sigmoid(gates[:, 3 * H:])
            c_new = f * c + i * g
            h_new = o * jnp.tanh(c_new)
            c = jnp.where(mt > 0, c_new, c); h = jnp.where(mt > 0, h_new, h)
            return (h, c), jnp.where(mt > 0, h_new, 0.0)
        init = (jnp.zeros((B, H)), jnp.zeros((B, H)))
        _, out = lax.scan(step, init, (xs, ms))
        return out

    out_f = run_dir(x, mask, p["wif"], p["whf"], p["bf"])
    out_b = run_dir(x[::-1], mask[::-1], p["wib"], p["whb"], p["bb"])[::-1]
    logits = out_f @ p["wfc_f"] + out_b @ p["wfc_b"] + p["bfc"][None]
    return jnp.transpose(logits, (1, 0, 2))


if __name__ == "__main__":
    # Small, module-consistent shapes.
    vocab, E = 50, 32          # embeddings: (vocab, embedding_dim)
    B, T = 2, 8
    H = 32                     # hidden_size
    NC = 9                     # num_class
    C, K = 32, 3               # out_channels, kernel_size (odd)

    key = jax.random.PRNGKey(0)
    ks = jax.random.split(key, 14)
    s = 0.1
    params = {
        "emb":    jax.random.normal(ks[0], (vocab, E), jnp.float32) * s,
        "conv_w": jax.random.normal(ks[1], (K, E, C), jnp.float32) * s,
        "conv_b": jax.random.normal(ks[2], (1, C), jnp.float32) * s,
        # forward-direction LSTM (gate order i,f,g,o; bias = b_ih + b_hh)
        "wif":    jax.random.normal(ks[3], (C, 4 * H), jnp.float32) * s,
        "whf":    jax.random.normal(ks[4], (H, 4 * H), jnp.float32) * s,
        "bf":     jax.random.normal(ks[5], (1, 4 * H), jnp.float32) * s,
        # backward-direction LSTM
        "wib":    jax.random.normal(ks[6], (C, 4 * H), jnp.float32) * s,
        "whb":    jax.random.normal(ks[7], (H, 4 * H), jnp.float32) * s,
        "bb":     jax.random.normal(ks[8], (1, 4 * H), jnp.float32) * s,
        # fc: Linear(2H -> NC), weight split into fwd/bwd halves
        "wfc_f":  jax.random.normal(ks[9], (H, NC), jnp.float32) * s,
        "wfc_b":  jax.random.normal(ks[10], (H, NC), jnp.float32) * s,
        "bfc":    jax.random.normal(ks[11], (1, NC), jnp.float32) * s,
    }

    tokens = jax.random.randint(ks[12], (B, T), 0, vocab, dtype=jnp.int32)
    lengths = jnp.array([8, 5], dtype=jnp.int32)   # sorted descending (pack_padded requirement)

    out = slot_tagger_forward(tokens, lengths, params, hidden_size=H, kernel_size=K)
    out = jax.block_until_ready(out)
    assert out.shape == (B, T, NC), out.shape

    ref = reference_forward(tokens, lengths, params, H, K)
    assert jnp.allclose(out, ref, atol=1e-4, rtol=1e-4), float(jnp.max(jnp.abs(out - ref)))

    print("KERNEL_OK")
</pallas_src>

<mosaic_0001>
module attributes {stable_mosaic.version = 11 : i64} {
  func.func @slot_tagger_kernel(%arg0: i32, %arg1: memref<16x96xf32, #tpu.memory_space<vmem>>, %arg2: memref<8x4x1xf32, #tpu.memory_space<vmem>>, %arg3: memref<96x256xf32, #tpu.memory_space<vmem>>, %arg4: memref<1x256xf32, #tpu.memory_space<vmem>>, %arg5: memref<32x128xf32, #tpu.memory_space<vmem>>, %arg6: memref<32x128xf32, #tpu.memory_space<vmem>>, %arg7: memref<64x128xf32, #tpu.memory_space<vmem>>, %arg8: memref<1x128xf32, #tpu.memory_space<vmem>>, %arg9: memref<16x128xf32, #tpu.memory_space<vmem>>, %arg10: memref<8x2x256xf32, #tpu.memory_space<vmem>>, %arg11: memref<16x64xf32, #tpu.memory_space<vmem>>) attributes {dimension_semantics = [#tpu.dimension_semantics<arbitrary>], iteration_bounds = array<i64: 1>, scalar_prefetch = 0 : i64, scratch_operands = 2 : i64, tpu.core_type = #tpu.core_type<tc>, window_params = [{pipeline_mode = #tpu.pipeline_mode<synchronous>, transform_indices = @transform_0, window_bounds = array<i64: 16, 96>}, {pipeline_mode = #tpu.pipeline_mode<synchronous>, transform_indices = @transform_1, window_bounds = array<i64: 8, 4, 1>}, {pipeline_mode = #tpu.pipeline_mode<synchronous>, transform_indices = @transform_2, window_bounds = array<i64: 96, 256>}, {pipeline_mode = #tpu.pipeline_mode<synchronous>, transform_indices = @transform_3, window_bounds = array<i64: 1, 256>}, {pipeline_mode = #tpu.pipeline_mode<synchronous>, transform_indices = @transform_4, window_bounds = array<i64: 32, 128>}, {pipeline_mode = #tpu.pipeline_mode<synchronous>, transform_indices = @transform_5, window_bounds = array<i64: 32, 128>}, {pipeline_mode = #tpu.pipeline_mode<synchronous>, transform_indices = @transform_6, window_bounds = array<i64: 64, 128>}, {pipeline_mode = #tpu.pipeline_mode<synchronous>, transform_indices = @transform_7, window_bounds = array<i64: 1, 128>}, {pipeline_mode = #tpu.pipeline_mode<synchronous>, transform_indices = @transform_8, window_bounds = array<i64: 16, 128>}]} {
    %c0 = arith.constant 0 : index
    %c0_0 = arith.constant 0 : index
    %0 = vector.load %arg1[%c0, %c0_0] : memref<16x96xf32, #tpu.memory_space<vmem>>, vector<16x96xf32>
    %c0_1 = arith.constant 0 : index
    %c0_2 = arith.constant 0 : index
    %1 = vector.load %arg3[%c0_1, %c0_2] : memref<96x256xf32, #tpu.memory_space<vmem>>, vector<96x256xf32>
    %cst = arith.constant dense<0.000000e+00> : vector<16x256xf32>
    %2 = tpu.matmul %0, %1, %cst {dimension_numbers = #tpu.dot_dimension_numbers<[1], [0], [0], [1], [0, 0, 1, 1], [], []>} : vector<16x96xf32>, vector<96x256xf32>, vector<16x256xf32> -> vector<16x256xf32>
    %c0_3 = arith.constant 0 : index
    %c0_4 = arith.constant 0 : index
    %3 = vector.load %arg4[%c0_3, %c0_4] : memref<1x256xf32, #tpu.memory_space<vmem>>, vector<1x256xf32>
    %4 = vector.broadcast %3 : vector<1x256xf32> to vector<16x256xf32>
    %5 = arith.addf %2, %4 : vector<16x256xf32>
    %6 = vector.extract_strided_slice %5 {offsets = [0, 0], sizes = [2, 256], strides = [1, 1]} : vector<16x256xf32> to vector<2x256xf32>
    %c0_5 = arith.constant 0 : index
    %c0_6 = arith.constant 0 : index
    %c0_7 = arith.constant 0 : index
    %7 = vector.load %arg10[%c0_5, %c0_6, %c0_7] : memref<8x2x256xf32, #tpu.memory_space<vmem>>, vector<1x2x256xf32>
    %8 = vector.shape_cast %7 : vector<1x2x256xf32> to vector<2x256xf32>
    %9 = vector.shape_cast %6 : vector<2x256xf32> to vector<1x2x256xf32>
    tpu.vector_store %arg10[%c0_5, %c0_6, %c0_7], %9 {strides = array<i32>} : memref<8x2x256xf32, #tpu.memory_space<vmem>>, vector<1x2x256xf32>,
    %10 = vector.extract_strided_slice %5 {offsets = [2, 0], sizes = [2, 256], strides = [1, 1]} : vector<16x256xf32> to vector<2x256xf32>
    %c1 = arith.constant 1 : index
    %c0_8 = arith.constant 0 : index
    %c0_9 = arith.constant 0 : index
    %11 = vector.load %arg10[%c1, %c0_8, %c0_9] : memref<8x2x256xf32, #tpu.memory_space<vmem>>, vector<1x2x256xf32>
    %12 = vector.shape_cast %11 : vector<1x2x256xf32> to vector<2x256xf32>
    %13 = vector.shape_cast %10 : vector<2x256xf32> to vector<1x2x256xf32>
    tpu.vector_store %arg10[%c1, %c0_8, %c0_9], %13 {strides = array<i32>} : memref<8x2x256xf32, #tpu.memory_space<vmem>>, vector<1x2x256xf32>,
    %14 = vector.extract_strided_slice %5 {offsets = [4, 0], sizes = [2, 256], strides = [1, 1]} : vector<16x256xf32> to vector<2x256xf32>
    %c2 = arith.constant 2 : index
    %c0_10 = arith.constant 0 : index
    %c0_11 = arith.constant 0 : index
    %15 = vector.load %arg10[%c2, %c0_10, %c0_11] : memref<8x2x256xf32, #tpu.memory_space<vmem>>, vector<1x2x256xf32>
    %16 = vector.shape_cast %15 : vector<1x2x256xf32> to vector<2x256xf32>
    %17 = vector.shape_cast %14 : vector<2x256xf32> to vector<1x2x256xf32>
    tpu.vector_store %arg10[%c2, %c0_10, %c0_11], %17 {strides = array<i32>} : memref<8x2x256xf32, #tpu.memory_space<vmem>>, vector<1x2x256xf32>,
    %18 = vector.extract_strided_slice %5 {offsets = [6, 0], sizes = [2, 256], strides = [1, 1]} : vector<16x256xf32> to vector<2x256xf32>
    %c3 = arith.constant 3 : index
    %c0_12 = arith.constant 0 : index
    %c0_13 = arith.constant 0 : index
    %19 = vector.load %arg10[%c3, %c0_12, %c0_13] : memref<8x2x256xf32, #tpu.memory_space<vmem>>, vector<1x2x256xf32>
    %20 = vector.shape_cast %19 : vector<1x2x256xf32> to vector<2x256xf32>
    %21 = vector.shape_cast %18 : vector<2x256xf32> to vector<1x2x256xf32>
    tpu.vector_store %arg10[%c3, %c0_12, %c0_13], %21 {strides = array<i32>} : memref<8x2x256xf32, #tpu.memory_space<vmem>>, vector<1x2x256xf32>,
    %22 = vector.extract_strided_slice %5 {offsets = [8, 0], sizes = [2, 256], strides = [1, 1]} : vector<16x256xf32> to vector<2x256xf32>
    %c4 = arith.constant 4 : index
    %c0_14 = arith.constant 0 : index
    %c0_15 = arith.constant 0 : index
    %23 = vector.load %arg10[%c4, %c0_14, %c0_15] : memref<8x2x256xf32, #tpu.memory_space<vmem>>, vector<1x2x256xf32>
    %24 = vector.shape_cast %23 : vector<1x2x256xf32> to vector<2x256xf32>
    %25 = vector.shape_cast %22 : vector<2x256xf32> to vector<1x2x256xf32>
    tpu.vector_store %arg10[%c4, %c0_14, %c0_15], %25 {strides = array<i32>} : memref<8x2x256xf32, #tpu.memory_space<vmem>>, vector<1x2x256xf32>,
    %26 = vector.extract_strided_slice %5 {offsets = [10, 0], sizes = [2, 256], strides = [1, 1]} : vector<16x256xf32> to vector<2x256xf32>
    %c5 = arith.constant 5 : index
    %c0_16 = arith.constant 0 : index
    %c0_17 = arith.constant 0 : index
    %27 = vector.load %arg10[%c5, %c0_16, %c0_17] : memref<8x2x256xf32, #tpu.memory_space<vmem>>, vector<1x2x256xf32>
    %28 = vector.shape_cast %27 : vector<1x2x256xf32> to vector<2x256xf32>
    %29 = vector.shape_cast %26 : vector<2x256xf32> to vector<1x2x256xf32>
    tpu.vector_store %arg10[%c5, %c0_16, %c0_17], %29 {strides = array<i32>} : memref<8x2x256xf32, #tpu.memory_space<vmem>>, vector<1x2x256xf32>,
    %30 = vector.extract_strided_slice %5 {offsets = [12, 0], sizes = [2, 256], strides = [1, 1]} : vector<16x256xf32> to vector<2x256xf32>
    %c6 = arith.constant 6 : index
    %c0_18 = arith.constant 0 : index
    %c0_19 = arith.constant 0 : index
    %31 = vector.load %arg10[%c6, %c0_18, %c0_19] : memref<8x2x256xf32, #tpu.memory_space<vmem>>, vector<1x2x256xf32>
    %32 = vector.shape_cast %31 : vector<1x2x256xf32> to vector<2x256xf32>
    %33 = vector.shape_cast %30 : vector<2x256xf32> to vector<1x2x256xf32>
    tpu.vector_store %arg10[%c6, %c0_18, %c0_19], %33 {strides = array<i32>} : memref<8x2x256xf32, #tpu.memory_space<vmem>>, vector<1x2x256xf32>,
    %34 = vector.extract_strided_slice %5 {offsets = [14, 0], sizes = [2, 256], strides = [1, 1]} : vector<16x256xf32> to vector<2x256xf32>
    %c7 = arith.constant 7 : index
    %c0_20 = arith.constant 0 : index
    %c0_21 = arith.constant 0 : index
    %35 = vector.load %arg10[%c7, %c0_20, %c0_21] : memref<8x2x256xf32, #tpu.memory_space<vmem>>, vector<1x2x256xf32>
    %36 = vector.shape_cast %35 : vector<1x2x256xf32> to vector<2x256xf32>
    %37 = vector.shape_cast %34 : vector<2x256xf32> to vector<1x2x256xf32>
    tpu.vector_store %arg10[%c7, %c0_20, %c0_21], %37 {strides = array<i32>} : memref<8x2x256xf32, #tpu.memory_space<vmem>>, vector<1x2x256xf32>,
    %cst_22 = arith.constant 0.000000e+00 : f32
    %38 = vector.broadcast %cst_22 : f32 to vector<4x32xf32>
    %c0_i32 = arith.constant 0 : i32
    %c7_i32 = arith.constant 7 : i32
    %39 = arith.subi %c7_i32, %c0_i32 : i32
    %40 = vector.extract_strided_slice %38 {offsets = [0, 0], sizes = [2, 32], strides = [1, 1]} : vector<4x32xf32> to vector<2x32xf32>
    %c0_23 = arith.constant 0 : index
    %c0_24 = arith.constant 0 : index
    %41 = vector.load %arg5[%c0_23, %c0_24] : memref<32x128xf32, #tpu.memory_space<vmem>>, vector<32x128xf32>
    %cst_25 = arith.constant dense<0.000000e+00> : vector<2x128xf32>
    %42 = tpu.matmul %40, %41, %cst_25 {dimension_numbers = #tpu.dot_dimension_numbers<[1], [0], [0], [1], [0, 0, 1, 1], [], []>} : vector<2x32xf32>, vector<32x128xf32>, vector<2x128xf32> -> vector<2x128xf32>
    %43 = vector.extract_strided_slice %38 {offsets = [2, 0], sizes = [2, 32], strides = [1, 1]} : vector<4x32xf32> to vector<2x32xf32>
    %c0_26 = arith.constant 0 : index
    %c0_27 = arith.constant 0 : index
    %44 = vector.load %arg6[%c0_26, %c0_27] : memref<32x128xf32, #tpu.memory_space<vmem>>, vector<32x128xf32>
    %cst_28 = arith.constant dense<0.000000e+00> : vector<2x128xf32>
    %45 = tpu.matmul %43, %44, %cst_28 {dimension_numbers = #tpu.dot_dimension_numbers<[1], [0], [0], [1], [0, 0, 1, 1], [], []>} : vector<2x32xf32>, vector<32x128xf32>, vector<2x128xf32> -> vector<2x128xf32>
    %46 = arith.index_cast %c0_i32 : i32 to index
    %c0_29 = arith.constant 0 : index
    %c0_30 = arith.constant 0 : index
    %47 = vector.load %arg10[%46, %c0_29, %c0_30] : memref<8x2x256xf32, #tpu.memory_space<vmem>>, vector<1x2x128xf32>
    %48 = vector.shape_cast %47 : vector<1x2x128xf32> to vector<2x128xf32>
    %49 = arith.index_cast %39 : i32 to index
    %c0_31 = arith.constant 0 : index
    %c128 = arith.constant 128 : index
    %50 = vector.load %arg10[%49, %c0_31, %c128] : memref<8x2x256xf32, #tpu.memory_space<vmem>>, vector<1x2x128xf32>
    %51 = vector.shape_cast %50 : vector<1x2x128xf32> to vector<2x128xf32>
    %52 = arith.addf %48, %42 : vector<2x128xf32>
    %53 = arith.addf %51, %45 : vector<2x128xf32>
    %54 = tpu.concatenate %52, %53 in 0 : vector<2x128xf32>, vector<2x128xf32> -> vector<4x128xf32>
    %55 = vector.extract_strided_slice %54 {offsets = [0, 0], sizes = [4, 32], strides = [1, 1]} : vector<4x128xf32> to vector<4x32xf32>
    %56 = arith.negf %55 : vector<4x32xf32>
    %57 = math.exp %56 : vector<4x32xf32>
    %cst_32 = arith.constant 1.000000e+00 : f32
    %58 = vector.broadcast %cst_32 : f32 to vector<4x32xf32>
    %59 = arith.addf %58, %57 : vector<4x32xf32>
    %60 = arith.divf %58, %59 : vector<4x32xf32>
    %61 = vector.extract_strided_slice %54 {offsets = [0, 32], sizes = [4, 32], strides = [1, 1]} : vector<4x128xf32> to vector<4x32xf32>
    %62 = arith.negf %61 : vector<4x32xf32>
    %63 = math.exp %62 : vector<4x32xf32>
    %cst_33 = arith.constant 1.000000e+00 : f32
    %64 = vector.broadcast %cst_33 : f32 to vector<4x32xf32>
    %65 = arith.addf %64, %63 : vector<4x32xf32>
    %66 = arith.divf %64, %65 : vector<4x32xf32>
    %67 = vector.extract_strided_slice %54 {offsets = [0, 64], sizes = [4, 32], strides = [1, 1]} : vector<4x128xf32> to vector<4x32xf32>
    %68 = math.tanh %67 : vector<4x32xf32>
    %69 = vector.extract_strided_slice %54 {offsets = [0, 96], sizes = [4, 32], strides = [1, 1]} : vector<4x128xf32> to vector<4x32xf32>
    %70 = arith.negf %69 : vector<4x32xf32>
    %71 = math.exp %70 : vector<4x32xf32>
    %cst_34 = arith.constant 1.000000e+00 : f32
    %72 = vector.broadcast %cst_34 : f32 to vector<4x32xf32>
    %73 = arith.addf %72, %71 : vector<4x32xf32>
    %74 = arith.divf %72, %73 : vector<4x32xf32>
    %75 = arith.mulf %66, %38 : vector<4x32xf32>
    %76 = arith.mulf %60, %68 : vector<4x32xf32>
    %77 = arith.addf %75, %76 : vector<4x32xf32>
    %78 = math.tanh %77 : vector<4x32xf32>
    %79 = arith.mulf %74, %78 : vector<4x32xf32>
    %80 = arith.index_cast %c0_i32 : i32 to index
    %c0_35 = arith.constant 0 : index
    %c0_36 = arith.constant 0 : index
    %81 = vector.load %arg2[%80, %c0_35, %c0_36] : memref<8x4x1xf32, #tpu.memory_space<vmem>>, vector<1x4x1xf32>
    %82 = vector.shape_cast %81 : vector<1x4x1xf32> to vector<4x1xf32>
    %cst_37 = arith.constant 0.000000e+00 : f32
    %83 = vector.broadcast %cst_37 : f32 to vector<4x1xf32>
    %84 = arith.cmpf ogt, %82, %83 : vector<4x1xf32>
    %85 = vector.broadcast %82 : vector<4x1xf32> to vector<4x32xf32>
    %86 = arith.mulf %79, %85 : vector<4x32xf32>
    %87 = vector.extract_strided_slice %86 {offsets = [0, 0], sizes = [2, 32], strides = [1, 1]} : vector<4x32xf32> to vector<2x32xf32>
    %c2_i32 = arith.constant 2 : i32
    %88 = arith.muli %c0_i32, %c2_i32 : i32
    %89 = arith.index_cast %88 : i32 to index
    %c0_38 = arith.constant 0 : index
    %90 = vector.load %arg11[%89, %c0_38] : memref<16x64xf32, #tpu.memory_space<vmem>>, vector<2x32xf32>
    tpu.vector_store %arg11[%89, %c0_38], %87 {strides = array<i32>} : memref<16x64xf32, #tpu.memory_space<vmem>>, vector<2x32xf32>,
    %91 = vector.extract_strided_slice %86 {offsets = [2, 0], sizes = [2, 32], strides = [1, 1]} : vector<4x32xf32> to vector<2x32xf32>
    %c2_i32_39 = arith.constant 2 : i32
    %92 = arith.muli %39, %c2_i32_39 : i32
    %93 = arith.index_cast %92 : i32 to index
    %c32 = arith.constant 32 : index
    %94 = vector.load %arg11[%93, %c32] : memref<16x64xf32, #tpu.memory_space<vmem>>, vector<2x32xf32>
    tpu.vector_store %arg11[%93, %c32], %91 {strides = array<i32>} : memref<16x64xf32, #tpu.memory_space<vmem>>, vector<2x32xf32>,
    %95 = vector.shape_cast %84 : vector<4x1xi1> to vector<4x1xi1>
    %96 = vector.broadcast %95 : vector<4x1xi1> to vector<4x32xi1>
    %97 = arith.select %96, %79, %38 : vector<4x32xi1>, vector<4x32xf32>
    %98 = vector.shape_cast %84 : vector<4x1xi1> to vector<4x1xi1>
    %99 = vector.broadcast %98 : vector<4x1xi1> to vector<4x32xi1>
    %100 = arith.select %99, %77, %38 : vector<4x32xi1>, vector<4x32xf32>
    %c1_i32 = arith.constant 1 : i32
    %c7_i32_40 = arith.constant 7 : i32
    %101 = arith.subi %c7_i32_40, %c1_i32 : i32
    %102 = vector.extract_strided_slice %97 {offsets = [0, 0], sizes = [2, 32], strides = [1, 1]} : vector<4x32xf32> to vector<2x32xf32>
    %c0_41 = arith.constant 0 : index
    %c0_42 = arith.constant 0 : index
    %103 = vector.load %arg5[%c0_41, %c0_42] : memref<32x128xf32, #tpu.memory_space<vmem>>, vector<32x128xf32>
    %cst_43 = arith.constant dense<0.000000e+00> : vector<2x128xf32>
    %104 = tpu.matmul %102, %103, %cst_43 {dimension_numbers = #tpu.dot_dimension_numbers<[1], [0], [0], [1], [0, 0, 1, 1], [], []>} : vector<2x32xf32>, vector<32x128xf32>, vector<2x128xf32> -> vector<2x128xf32>
    %105 = vector.extract_strided_slice %97 {offsets = [2, 0], sizes = [2, 32], strides = [1, 1]} : vector<4x32xf32> to vector<2x32xf32>
    %c0_44 = arith.constant 0 : index
    %c0_45 = arith.constant 0 : index
    %106 = vector.load %arg6[%c0_44, %c0_45] : memref<32x128xf32, #tpu.memory_space<vmem>>, vector<32x128xf32>
    %cst_46 = arith.constant dense<0.000000e+00> : vector<2x128xf32>
    %107 = tpu.matmul %105, %106, %cst_46 {dimension_numbers = #tpu.dot_dimension_numbers<[1], [0], [0], [1], [0, 0, 1, 1], [], []>} : vector<2x32xf32>, vector<32x128xf32>, vector<2x128xf32> -> vector<2x128xf32>
    %108 = arith.index_cast %c1_i32 : i32 to index
    %c0_47 = arith.constant 0 : index
    %c0_48 = arith.constant 0 : index
    %109 = vector.load %arg10[%108, %c0_47, %c0_48] : memref<8x2x256xf32, #tpu.memory_space<vmem>>, vector<1x2x128xf32>
    %110 = vector.shape_cast %109 : vector<1x2x128xf32> to vector<2x128xf32>
    %111 = arith.index_cast %101 : i32 to index
    %c0_49 = arith.constant 0 : index
    %c128_50 = arith.constant 128 : index
    %112 = vector.load %arg10[%111, %c0_49, %c128_50] : memref<8x2x256xf32, #tpu.memory_space<vmem>>, vector<1x2x128xf32>
    %113 = vector.shape_cast %112 : vector<1x2x128xf32> to vector<2x128xf32>
    %114 = arith.addf %110, %104 : vector<2x128xf32>
    %115 = arith.addf %113, %107 : vector<2x128xf32>
    %116 = tpu.concatenate %114, %115 in 0 : vector<2x128xf32>, vector<2x128xf32> -> vector<4x128xf32>
    %117 = vector.extract_strided_slice %116 {offsets = [0, 0], sizes = [4, 32], strides = [1, 1]} : vector<4x128xf32> to vector<4x32xf32>
    %118 = arith.negf %117 : vector<4x32xf32>
    %119 = math.exp %118 : vector<4x32xf32>
    %cst_51 = arith.constant 1.000000e+00 : f32
    %120 = vector.broadcast %cst_51 : f32 to vector<4x32xf32>
    %121 = arith.addf %120, %119 : vector<4x32xf32>
    %122 = arith.divf %120, %121 : vector<4x32xf32>
    %123 = vector.extract_strided_slice %116 {offsets = [0, 32], sizes = [4, 32], strides = [1, 1]} : vector<4x128xf32> to vector<4x32xf32>
    %124 = arith.negf %123 : vector<4x32xf32>
    %125 = math.exp %124 : vector<4x32xf32>
    %cst_52 = arith.constant 1.000000e+00 : f32
    %126 = vector.broadcast %cst_52 : f32 to vector<4x32xf32>
    %127 = arith.addf %126, %125 : vector<4x32xf32>
    %128 = arith.divf %126, %127 : vector<4x32xf32>
    %129 = vector.extract_strided_slice %116 {offsets = [0, 64], sizes = [4, 32], strides = [1, 1]} : vector<4x128xf32> to vector<4x32xf32>
    %130 = math.tanh %129 : vector<4x32xf32>
    %131 = vector.extract_strided_slice %116 {offsets = [0, 96], sizes = [4, 32], strides = [1, 1]} : vector<4x128xf32> to vector<4x32xf32>
    %132 = arith.negf %131 : vector<4x32xf32>
    %133 = math.exp %132 : vector<4x32xf32>
    %cst_53 = arith.constant 1.000000e+00 : f32
    %134 = vector.broadcast %cst_53 : f32 to vector<4x32xf32>
    %135 = arith.addf %134, %133 : vector<4x32xf32>
    %136 = arith.divf %134, %135 : vector<4x32xf32>
    %137 = arith.mulf %128, %100 : vector<4x32xf32>
    %138 = arith.mulf %122, %130 : vector<4x32xf32>
    %139 = arith.addf %137, %138 : vector<4x32xf32>
    %140 = math.tanh %139 : vector<4x32xf32>
    %141 = arith.mulf %136, %140 : vector<4x32xf32>
    %142 = arith.index_cast %c1_i32 : i32 to index
    %c0_54 = arith.constant 0 : index
    %c0_55 = arith.constant 0 : index
    %143 = vector.load %arg2[%142, %c0_54, %c0_55] : memref<8x4x1xf32, #tpu.memory_space<vmem>>, vector<1x4x1xf32>
    %144 = vector.shape_cast %143 : vector<1x4x1xf32> to vector<4x1xf32>
    %cst_56 = arith.constant 0.000000e+00 : f32
    %145 = vector.broadcast %cst_56 : f32 to vector<4x1xf32>
    %146 = arith.cmpf ogt, %144, %145 : vector<4x1xf32>
    %147 = vector.broadcast %144 : vector<4x1xf32> to vector<4x32xf32>
    %148 = arith.mulf %141, %147 : vector<4x32xf32>
    %149 = vector.extract_strided_slice %148 {offsets = [0, 0], sizes = [2, 32], strides = [1, 1]} : vector<4x32xf32> to vector<2x32xf32>
    %c2_i32_57 = arith.constant 2 : i32
    %150 = arith.muli %c1_i32, %c2_i32_57 : i32
    %151 = arith.index_cast %150 : i32 to index
    %c0_58 = arith.constant 0 : index
    %152 = vector.load %arg11[%151, %c0_58] : memref<16x64xf32, #tpu.memory_space<vmem>>, vector<2x32xf32>
    tpu.vector_store %arg11[%151, %c0_58], %149 {strides = array<i32>} : memref<16x64xf32, #tpu.memory_space<vmem>>, vector<2x32xf32>,
    %153 = vector.extract_strided_slice %148 {offsets = [2, 0], sizes = [2, 32], strides = [1, 1]} : vector<4x32xf32> to vector<2x32xf32>
    %c2_i32_59 = arith.constant 2 : i32
    %154 = arith.muli %101, %c2_i32_59 : i32
    %155 = arith.index_cast %154 : i32 to index
    %c32_60 = arith.constant 32 : index
    %156 = vector.load %arg11[%155, %c32_60] : memref<16x64xf32, #tpu.memory_space<vmem>>, vector<2x32xf32>
    tpu.vector_store %arg11[%155, %c32_60], %153 {strides = array<i32>} : memref<16x64xf32, #tpu.memory_space<vmem>>, vector<2x32xf32>,
    %157 = vector.shape_cast %146 : vector<4x1xi1> to vector<4x1xi1>
    %158 = vector.broadcast %157 : vector<4x1xi1> to vector<4x32xi1>
    %159 = arith.select %158, %141, %97 : vector<4x32xi1>, vector<4x32xf32>
    %160 = vector.shape_cast %146 : vector<4x1xi1> to vector<4x1xi1>
    %161 = vector.broadcast %160 : vector<4x1xi1> to vector<4x32xi1>
    %162 = arith.select %161, %139, %100 : vector<4x32xi1>, vector<4x32xf32>
    %c2_i32_61 = arith.constant 2 : i32
    %c7_i32_62 = arith.constant 7 : i32
    %163 = arith.subi %c7_i32_62, %c2_i32_61 : i32
    %164 = vector.extract_strided_slice %159 {offsets = [0, 0], sizes = [2, 32], strides = [1, 1]} : vector<4x32xf32> to vector<2x32xf32>
    %c0_63 = arith.constant 0 : index
    %c0_64 = arith.constant 0 : index
    %165 = vector.load %arg5[%c0_63, %c0_64] : memref<32x128xf32, #tpu.memory_space<vmem>>, vector<32x128xf32>
    %cst_65 = arith.constant dense<0.000000e+00> : vector<2x128xf32>
    %166 = tpu.matmul %164, %165, %cst_65 {dimension_numbers = #tpu.dot_dimension_numbers<[1], [0], [0], [1], [0, 0, 1, 1], [], []>} : vector<2x32xf32>, vector<32x128xf32>, vector<2x128xf32> -> vector<2x128xf32>
    %167 = vector.extract_strided_slice %159 {offsets = [2, 0], sizes = [2, 32], strides = [1, 1]} : vector<4x32xf32> to vector<2x32xf32>
    %c0_66 = arith.constant 0 : index
    %c0_67 = arith.constant 0 : index
    %168 = vector.load %arg6[%c0_66, %c0_67] : memref<32x128xf32, #tpu.memory_space<vmem>>, vector<32x128xf32>
    %cst_68 = arith.constant dense<0.000000e+00> : vector<2x128xf32>
    %169 = tpu.matmul %167, %168, %cst_68 {dimension_numbers = #tpu.dot_dimension_numbers<[1], [0], [0], [1], [0, 0, 1, 1], [], []>} : vector<2x32xf32>, vector<32x128xf32>, vector<2x128xf32> -> vector<2x128xf32>
    %170 = arith.index_cast %c2_i32_61 : i32 to index
    %c0_69 = arith.constant 0 : index
    %c0_70 = arith.constant 0 : index
    %171 = vector.load %arg10[%170, %c0_69, %c0_70] : memref<8x2x256xf32, #tpu.memory_space<vmem>>, vector<1x2x128xf32>
    %172 = vector.shape_cast %171 : vector<1x2x128xf32> to vector<2x128xf32>
    %173 = arith.index_cast %163 : i32 to index
    %c0_71 = arith.constant 0 : index
    %c128_72 = arith.constant 128 : index
    %174 = vector.load %arg10[%173, %c0_71, %c128_72] : memref<8x2x256xf32, #tpu.memory_space<vmem>>, vector<1x2x128xf32>
    %175 = vector.shape_cast %174 : vector<1x2x128xf32> to vector<2x128xf32>
    %176 = arith.addf %172, %166 : vector<2x128xf32>
    %177 = arith.addf %175, %169 : vector<2x128xf32>
    %178 = tpu.concatenate %176, %177 in 0 : vector<2x128xf32>, vector<2x128xf32> -> vector<4x128xf32>
    %179 = vector.extract_strided_slice %178 {offsets = [0, 0], sizes = [4, 32], strides = [1, 1]} : vector<4x128xf32> to vector<4x32xf32>
    %180 = arith.negf %179 : vector<4x32xf32>
    %181 = math.exp %180 : vector<4x32xf32>
    %cst_73 = arith.constant 1.000000e+00 : f32
    %182 = vector.broadcast %cst_73 : f32 to vector<4x32xf32>
    %183 = arith.addf %182, %181 : vector<4x32xf32>
    %184 = arith.divf %182, %183 : vector<4x32xf32>
    %185 = vector.extract_strided_slice %178 {offsets = [0, 32], sizes = [4, 32], strides = [1, 1]} : vector<4x128xf32> to vector<4x32xf32>
    %186 = arith.negf %185 : vector<4x32xf32>
    %187 = math.exp %186 : vector<4x32xf32>
    %cst_74 = arith.constant 1.000000e+00 : f32
    %188 = vector.broadcast %cst_74 : f32 to vector<4x32xf32>
    %189 = arith.addf %188, %187 : vector<4x32xf32>
    %190 = arith.divf %188, %189 : vector<4x32xf32>
    %191 = vector.extract_strided_slice %178 {offsets = [0, 64], sizes = [4, 32], strides = [1, 1]} : vector<4x128xf32> to vector<4x32xf32>
    %192 = math.tanh %191 : vector<4x32xf32>
    %193 = vector.extract_strided_slice %178 {offsets = [0, 96], sizes = [4, 32], strides = [1, 1]} : vector<4x128xf32> to vector<4x32xf32>
    %194 = arith.negf %193 : vector<4x32xf32>
    %195 = math.exp %194 : vector<4x32xf32>
    %cst_75 = arith.constant 1.000000e+00 : f32
    %196 = vector.broadcast %cst_75 : f32 to vector<4x32xf32>
    %197 = arith.addf %196, %195 : vector<4x32xf32>
    %198 = arith.divf %196, %197 : vector<4x32xf32>
    %199 = arith.mulf %190, %162 : vector<4x32xf32>
    %200 = arith.mulf %184, %192 : vector<4x32xf32>
    %201 = arith.addf %199, %200 : vector<4x32xf32>
    %202 = math.tanh %201 : vector<4x32xf32>
    %203 = arith.mulf %198, %202 : vector<4x32xf32>
    %204 = arith.index_cast %c2_i32_61 : i32 to index
    %c0_76 = arith.constant 0 : index
    %c0_77 = arith.constant 0 : index
    %205 = vector.load %arg2[%204, %c0_76, %c0_77] : memref<8x4x1xf32, #tpu.memory_space<vmem>>, vector<1x4x1xf32>
    %206 = vector.shape_cast %205 : vector<1x4x1xf32> to vector<4x1xf32>
    %cst_78 = arith.constant 0.000000e+00 : f32
    %207 = vector.broadcast %cst_78 : f32 to vector<4x1xf32>
    %208 = arith.cmpf ogt, %206, %207 : vector<4x1xf32>
    %209 = vector.broadcast %206 : vector<4x1xf32> to vector<4x32xf32>
    %210 = arith.mulf %203, %209 : vector<4x32xf32>
    %211 = vector.extract_strided_slice %210 {offsets = [0, 0], sizes = [2, 32], strides = [1, 1]} : vector<4x32xf32> to vector<2x32xf32>
    %c2_i32_79 = arith.constant 2 : i32
    %212 = arith.muli %c2_i32_61, %c2_i32_79 : i32
    %213 = arith.index_cast %212 : i32 to index
    %c0_80 = arith.constant 0 : index
    %214 = vector.load %arg11[%213, %c0_80] : memref<16x64xf32, #tpu.memory_space<vmem>>, vector<2x32xf32>
    tpu.vector_store %arg11[%213, %c0_80], %211 {strides = array<i32>} : memref<16x64xf32, #tpu.memory_space<vmem>>, vector<2x32xf32>,
    %215 = vector.extract_strided_slice %210 {offsets = [2, 0], sizes = [2, 32], strides = [1, 1]} : vector<4x32xf32> to vector<2x32xf32>
    %c2_i32_81 = arith.constant 2 : i32
    %216 = arith.muli %163, %c2_i32_81 : i32
    %217 = arith.index_cast %216 : i32 to index
    %c32_82 = arith.constant 32 : index
    %218 = vector.load %arg11[%217, %c32_82] : memref<16x64xf32, #tpu.memory_space<vmem>>, vector<2x32xf32>
    tpu.vector_store %arg11[%217, %c32_82], %215 {strides = array<i32>} : memref<16x64xf32, #tpu.memory_space<vmem>>, vector<2x32xf32>,
    %219 = vector.shape_cast %208 : vector<4x1xi1> to vector<4x1xi1>
    %220 = vector.broadcast %219 : vector<4x1xi1> to vector<4x32xi1>
    %221 = arith.select %220, %203, %159 : vector<4x32xi1>, vector<4x32xf32>
    %222 = vector.shape_cast %208 : vector<4x1xi1> to vector<4x1xi1>
    %223 = vector.broadcast %222 : vector<4x1xi1> to vector<4x32xi1>
    %224 = arith.select %223, %201, %162 : vector<4x32xi1>, vector<4x32xf32>
    %c3_i32 = arith.constant 3 : i32
    %c7_i32_83 = arith.constant 7 : i32
    %225 = arith.subi %c7_i32_83, %c3_i32 : i32
    %226 = vector.extract_strided_slice %221 {offsets = [0, 0], sizes = [2, 32], strides = [1, 1]} : vector<4x32xf32> to vector<2x32xf32>
    %c0_84 = arith.constant 0 : index
    %c0_85 = arith.constant 0 : index
    %227 = vector.load %arg5[%c0_84, %c0_85] : memref<32x128xf32, #tpu.memory_space<vmem>>, vector<32x128xf32>
    %cst_86 = arith.constant dense<0.000000e+00> : vector<2x128xf32>
    %228 = tpu.matmul %226, %227, %cst_86 {dimension_numbers = #tpu.dot_dimension_numbers<[1], [0], [0], [1], [0, 0, 1, 1], [], []>} : vector<2x32xf32>, vector<32x128xf32>, vector<2x128xf32> -> vector<2x128xf32>
    %229 = vector.extract_strided_slice %221 {offsets = [2, 0], sizes = [2, 32], strides = [1, 1]} : vector<4x32xf32> to vector<2x32xf32>
    %c0_87 = arith.constant 0 : index
    %c0_88 = arith.constant 0 : index
    %230 = vector.load %arg6[%c0_87, %c0_88] : memref<32x128xf32, #tpu.memory_space<vmem>>, vector<32x128xf32>
    %cst_89 = arith.constant dense<0.000000e+00> : vector<2x128xf32>
    %231 = tpu.matmul %229, %230, %cst_89 {dimension_numbers = #tpu.dot_dimension_numbers<[1], [0], [0], [1], [0, 0, 1, 1], [], []>} : vector<2x32xf32>, vector<32x128xf32>, vector<2x128xf32> -> vector<2x128xf32>
    %232 = arith.index_cast %c3_i32 : i32 to index
    %c0_90 = arith.constant 0 : index
    %c0_91 = arith.constant 0 : index
    %233 = vector.load %arg10[%232, %c0_90, %c0_91] : memref<8x2x256xf32, #tpu.memory_space<vmem>>, vector<1x2x128xf32>
    %234 = vector.shape_cast %233 : vector<1x2x128xf32> to vector<2x128xf32>
    %235 = arith.index_cast %225 : i32 to index
    %c0_92 = arith.constant 0 : index
    %c128_93 = arith.constant 128 : index
    %236 = vector.load %arg10[%235, %c0_92, %c128_93] : memref<8x2x256xf32, #tpu.memory_space<vmem>>, vector<1x2x128xf32>
    %237 = vector.shape_cast %236 : vector<1x2x128xf32> to vector<2x128xf32>
    %238 = arith.addf %234, %228 : vector<2x128xf32>
    %239 = arith.addf %237, %231 : vector<2x128xf32>
    %240 = tpu.concatenate %238, %239 in 0 : vector<2x128xf32>, vector<2x128xf32> -> vector<4x128xf32>
    %241 = vector.extract_strided_slice %240 {offsets = [0, 0], sizes = [4, 32], strides = [1, 1]} : vector<4x128xf32> to vector<4x32xf32>
    %242 = arith.negf %241 : vector<4x32xf32>
    %243 = math.exp %242 : vector<4x32xf32>
    %cst_94 = arith.constant 1.000000e+00 : f32
    %244 = vector.broadcast %cst_94 : f32 to vector<4x32xf32>
    %245 = arith.addf %244, %243 : vector<4x32xf32>
    %246 = arith.divf %244, %245 : vector<4x32xf32>
    %247 = vector.extract_strided_slice %240 {offsets = [0, 32], sizes = [4, 32], strides = [1, 1]} : vector<4x128xf32> to vector<4x32xf32>
    %248 = arith.negf %247 : vector<4x32xf32>
    %249 = math.exp %248 : vector<4x32xf32>
    %cst_95 = arith.constant 1.000000e+00 : f32
    %250 = vector.broadcast %cst_95 : f32 to vector<4x32xf32>
    %251 = arith.addf %250, %249 : vector<4x32xf32>
    %252 = arith.divf %250, %251 : vector<4x32xf32>
    %253 = vector.extract_strided_slice %240 {offsets = [0, 64], sizes = [4, 32], strides = [1, 1]} : vector<4x128xf32> to vector<4x32xf32>
    %254 = math.tanh %253 : vector<4x32xf32>
    %255 = vector.extract_strided_slice %240 {offsets = [0, 96], sizes = [4, 32], strides = [1, 1]} : vector<4x128xf32> to vector<4x32xf32>
    %256 = arith.negf %255 : vector<4x32xf32>
    %257 = math.exp %256 : vector<4x32xf32>
    %cst_96 = arith.constant 1.000000e+00 : f32
    %258 = vector.broadcast %cst_96 : f32 to vector<4x32xf32>
    %259 = arith.addf %258, %257 : vector<4x32xf32>
    %260 = arith.divf %258, %259 : vector<4x32xf32>
    %261 = arith.mulf %252, %224 : vector<4x32xf32>
    %262 = arith.mulf %246, %254 : vector<4x32xf32>
    %263 = arith.addf %261, %262 : vector<4x32xf32>
    %264 = math.tanh %263 : vector<4x32xf32>
    %265 = arith.mulf %260, %264 : vector<4x32xf32>
    %266 = arith.index_cast %c3_i32 : i32 to index
    %c0_97 = arith.constant 0 : index
    %c0_98 = arith.constant 0 : index
    %267 = vector.load %arg2[%266, %c0_97, %c0_98] : memref<8x4x1xf32, #tpu.memory_space<vmem>>, vector<1x4x1xf32>
    %268 = vector.shape_cast %267 : vector<1x4x1xf32> to vector<4x1xf32>
    %cst_99 = arith.constant 0.000000e+00 : f32
    %269 = vector.broadcast %cst_99 : f32 to vector<4x1xf32>
    %270 = arith.cmpf ogt, %268, %269 : vector<4x1xf32>
    %271 = vector.broadcast %268 : vector<4x1xf32> to vector<4x32xf32>
    %272 = arith.mulf %265, %271 : vector<4x32xf32>
    %273 = vector.extract_strided_slice %272 {offsets = [0, 0], sizes = [2, 32], strides = [1, 1]} : vector<4x32xf32> to vector<2x32xf32>
    %c2_i32_100 = arith.constant 2 : i32
    %274 = arith.muli %c3_i32, %c2_i32_100 : i32
    %275 = arith.index_cast %274 : i32 to index
    %c0_101 = arith.constant 0 : index
    %276 = vector.load %arg11[%275, %c0_101] : memref<16x64xf32, #tpu.memory_space<vmem>>, vector<2x32xf32>
    tpu.vector_store %arg11[%275, %c0_101], %273 {strides = array<i32>} : memref<16x64xf32, #tpu.memory_space<vmem>>, vector<2x32xf32>,
    %277 = vector.extract_strided_slice %272 {offsets = [2, 0], sizes = [2, 32], strides = [1, 1]} : vector<4x32xf32> to vector<2x32xf32>
    %c2_i32_102 = arith.constant 2 : i32
    %278 = arith.muli %225, %c2_i32_102 : i32
    %279 = arith.index_cast %278 : i32 to index
    %c32_103 = arith.constant 32 : index
    %280 = vector.load %arg11[%279, %c32_103] : memref<16x64xf32, #tpu.memory_space<vmem>>, vector<2x32xf32>
    tpu.vector_store %arg11[%279, %c32_103], %277 {strides = array<i32>} : memref<16x64xf32, #tpu.memory_space<vmem>>, vector<2x32xf32>,
    %281 = vector.shape_cast %270 : vector<4x1xi1> to vector<4x1xi1>
    %282 = vector.broadcast %281 : vector<4x1xi1> to vector<4x32xi1>
    %283 = arith.select %282, %265, %221 : vector<4x32xi1>, vector<4x32xf32>
    %284 = vector.shape_cast %270 : vector<4x1xi1> to vector<4x1xi1>
    %285 = vector.broadcast %284 : vector<4x1xi1> to vector<4x32xi1>
    %286 = arith.select %285, %263, %224 : vector<4x32xi1>, vector<4x32xf32>
    %c4_i32 = arith.constant 4 : i32
    %c7_i32_104 = arith.constant 7 : i32
    %287 = arith.subi %c7_i32_104, %c4_i32 : i32
    %288 = vector.extract_strided_slice %283 {offsets = [0, 0], sizes = [2, 32], strides = [1, 1]} : vector<4x32xf32> to vector<2x32xf32>
    %c0_105 = arith.constant 0 : index
    %c0_106 = arith.constant 0 : index
    %289 = vector.load %arg5[%c0_105, %c0_106] : memref<32x128xf32, #tpu.memory_space<vmem>>, vector<32x128xf32>
    %cst_107 = arith.constant dense<0.000000e+00> : vector<2x128xf32>
    %290 = tpu.matmul %288, %289, %cst_107 {dimension_numbers = #tpu.dot_dimension_numbers<[1], [0], [0], [1], [0, 0, 1, 1], [], []>} : vector<2x32xf32>, vector<32x128xf32>, vector<2x128xf32> -> vector<2x128xf32>
    %291 = vector.extract_strided_slice %283 {offsets = [2, 0], sizes = [2, 32], strides = [1, 1]} : vector<4x32xf32> to vector<2x32xf32>
    %c0_108 = arith.constant 0 : index
    %c0_109 = arith.constant 0 : index
    %292 = vector.load %arg6[%c0_108, %c0_109] : memref<32x128xf32, #tpu.memory_space<vmem>>, vector<32x128xf32>
    %cst_110 = arith.constant dense<0.000000e+00> : vector<2x128xf32>
    %293 = tpu.matmul %291, %292, %cst_110 {dimension_numbers = #tpu.dot_dimension_numbers<[1], [0], [0], [1], [0, 0, 1, 1], [], []>} : vector<2x32xf32>, vector<32x128xf32>, vector<2x128xf32> -> vector<2x128xf32>
    %294 = arith.index_cast %c4_i32 : i32 to index
    %c0_111 = arith.constant 0 : index
    %c0_112 = arith.constant 0 : index
    %295 = vector.load %arg10[%294, %c0_111, %c0_112] : memref<8x2x256xf32, #tpu.memory_space<vmem>>, vector<1x2x128xf32>
    %296 = vector.shape_cast %295 : vector<1x2x128xf32> to vector<2x128xf32>
    %297 = arith.index_cast %287 : i32 to index
    %c0_113 = arith.constant 0 : index
    %c128_114 = arith.constant 128 : index
    %298 = vector.load %arg10[%297, %c0_113, %c128_114] : memref<8x2x256xf32, #tpu.memory_space<vmem>>, vector<1x2x128xf32>
    %299 = vector.shape_cast %298 : vector<1x2x128xf32> to vector<2x128xf32>
    %300 = arith.addf %296, %290 : vector<2x128xf32>
    %301 = arith.addf %299, %293 : vector<2x128xf32>
    %302 = tpu.concatenate %300, %301 in 0 : vector<2x128xf32>, vector<2x128xf32> -> vector<4x128xf32>
    %303 = vector.extract_strided_slice %302 {offsets = [0, 0], sizes = [4, 32], strides = [1, 1]} : vector<4x128xf32> to vector<4x32xf32>
    %304 = arith.negf %303 : vector<4x32xf32>
    %305 = math.exp %304 : vector<4x32xf32>
    %cst_115 = arith.constant 1.000000e+00 : f32
    %306 = vector.broadcast %cst_115 : f32 to vector<4x32xf32>
    %307 = arith.addf %306, %305 : vector<4x32xf32>
    %308 = arith.divf %306, %307 : vector<4x32xf32>
    %309 = vector.extract_strided_slice %302 {offsets = [0, 32], sizes = [4, 32], strides = [1, 1]} : vector<4x128xf32> to vector<4x32xf32>
    %310 = arith.negf %309 : vector<4x32xf32>
    %311 = math.exp %310 : vector<4x32xf32>
    %cst_116 = arith.constant 1.000000e+00 : f32
    %312 = vector.broadcast %cst_116 : f32 to vector<4x32xf32>
    %313 = arith.addf %312, %311 : vector<4x32xf32>
    %314 = arith.divf %312, %313 : vector<4x32xf32>
    %315 = vector.extract_strided_slice %302 {offsets = [0, 64], sizes = [4, 32], strides = [1, 1]} : vector<4x128xf32> to vector<4x32xf32>
    %316 = math.tanh %315 : vector<4x32xf32>
    %317 = vector.extract_strided_slice %302 {offsets = [0, 96], sizes = [4, 32], strides = [1, 1]} : vector<4x128xf32> to vector<4x32xf32>
    %318 = arith.negf %317 : vector<4x32xf32>
    %319 = math.exp %318 : vector<4x32xf32>
    %cst_117 = arith.constant 1.000000e+00 : f32
    %320 = vector.broadcast %cst_117 : f32 to vector<4x32xf32>
    %321 = arith.addf %320, %319 : vector<4x32xf32>
    %322 = arith.divf %320, %321 : vector<4x32xf32>
    %323 = arith.mulf %314, %286 : vector<4x32xf32>
    %324 = arith.mulf %308, %316 : vector<4x32xf32>
    %325 = arith.addf %323, %324 : vector<4x32xf32>
    %326 = math.tanh %325 : vector<4x32xf32>
    %327 = arith.mulf %322, %326 : vector<4x32xf32>
    %328 = arith.index_cast %c4_i32 : i32 to index
    %c0_118 = arith.constant 0 : index
    %c0_119 = arith.constant 0 : index
    %329 = vector.load %arg2[%328, %c0_118, %c0_119] : memref<8x4x1xf32, #tpu.memory_space<vmem>>, vector<1x4x1xf32>
    %330 = vector.shape_cast %329 : vector<1x4x1xf32> to vector<4x1xf32>
    %cst_120 = arith.constant 0.000000e+00 : f32
    %331 = vector.broadcast %cst_120 : f32 to vector<4x1xf32>
    %332 = arith.cmpf ogt, %330, %331 : vector<4x1xf32>
    %333 = vector.broadcast %330 : vector<4x1xf32> to vector<4x32xf32>
    %334 = arith.mulf %327, %333 : vector<4x32xf32>
    %335 = vector.extract_strided_slice %334 {offsets = [0, 0], sizes = [2, 32], strides = [1, 1]} : vector<4x32xf32> to vector<2x32xf32>
    %c2_i32_121 = arith.constant 2 : i32
    %336 = arith.muli %c4_i32, %c2_i32_121 : i32
    %337 = arith.index_cast %336 : i32 to index
    %c0_122 = arith.constant 0 : index
    %338 = vector.load %arg11[%337, %c0_122] : memref<16x64xf32, #tpu.memory_space<vmem>>, vector<2x32xf32>
    tpu.vector_store %arg11[%337, %c0_122], %335 {strides = array<i32>} : memref<16x64xf32, #tpu.memory_space<vmem>>, vector<2x32xf32>,
    %339 = vector.extract_strided_slice %334 {offsets = [2, 0], sizes = [2, 32], strides = [1, 1]} : vector<4x32xf32> to vector<2x32xf32>
    %c2_i32_123 = arith.constant 2 : i32
    %340 = arith.muli %287, %c2_i32_123 : i32
    %341 = arith.index_cast %340 : i32 to index
    %c32_124 = arith.constant 32 : index
    %342 = vector.load %arg11[%341, %c32_124] : memref<16x64xf32, #tpu.memory_space<vmem>>, vector<2x32xf32>
    tpu.vector_store %arg11[%341, %c32_124], %339 {strides = array<i32>} : memref<16x64xf32, #tpu.memory_space<vmem>>, vector<2x32xf32>,
    %343 = vector.shape_cast %332 : vector<4x1xi1> to vector<4x1xi1>
    %344 = vector.broadcast %343 : vector<4x1xi1> to vector<4x32xi1>
    %345 = arith.select %344, %327, %283 : vector<4x32xi1>, vector<4x32xf32>
    %346 = vector.shape_cast %332 : vector<4x1xi1> to vector<4x1xi1>
    %347 = vector.broadcast %346 : vector<4x1xi1> to vector<4x32xi1>
    %348 = arith.select %347, %325, %286 : vector<4x32xi1>, vector<4x32xf32>
    %c5_i32 = arith.constant 5 : i32
    %c7_i32_125 = arith.constant 7 : i32
    %349 = arith.subi %c7_i32_125, %c5_i32 : i32
    %350 = vector.extract_strided_slice %345 {offsets = [0, 0], sizes = [2, 32], strides = [1, 1]} : vector<4x32xf32> to vector<2x32xf32>
    %c0_126 = arith.constant 0 : index
    %c0_127 = arith.constant 0 : index
    %351 = vector.load %arg5[%c0_126, %c0_127] : memref<32x128xf32, #tpu.memory_space<vmem>>, vector<32x128xf32>
    %cst_128 = arith.constant dense<0.000000e+00> : vector<2x128xf32>
    %352 = tpu.matmul %350, %351, %cst_128 {dimension_numbers = #tpu.dot_dimension_numbers<[1], [0], [0], [1], [0, 0, 1, 1], [], []>} : vector<2x32xf32>, vector<32x128xf32>, vector<2x128xf32> -> vector<2x128xf32>
    %353 = vector.extract_strided_slice %345 {offsets = [2, 0], sizes = [2, 32], strides = [1, 1]} : vector<4x32xf32> to vector<2x32xf32>
    %c0_129 = arith.constant 0 : index
    %c0_130 = arith.constant 0 : index
    %354 = vector.load %arg6[%c0_129, %c0_130] : memref<32x128xf32, #tpu.memory_space<vmem>>, vector<32x128xf32>
    %cst_131 = arith.constant dense<0.000000e+00> : vector<2x128xf32>
    %355 = tpu.matmul %353, %354, %cst_131 {dimension_numbers = #tpu.dot_dimension_numbers<[1], [0], [0], [1], [0, 0, 1, 1], [], []>} : vector<2x32xf32>, vector<32x128xf32>, vector<2x128xf32> -> vector<2x128xf32>
    %356 = arith.index_cast %c5_i32 : i32 to index
    %c0_132 = arith.constant 0 : index
    %c0_133 = arith.constant 0 : index
    %357 = vector.load %arg10[%356, %c0_132, %c0_133] : memref<8x2x256xf32, #tpu.memory_space<vmem>>, vector<1x2x128xf32>
    %358 = vector.shape_cast %357 : vector<1x2x128xf32> to vector<2x128xf32>
    %359 = arith.index_cast %349 : i32 to index
    %c0_134 = arith.constant 0 : index
    %c128_135 = arith.constant 128 : index
    %360 = vector.load %arg10[%359, %c0_134, %c128_135] : memref<8x2x256xf32, #tpu.memory_space<vmem>>, vector<1x2x128xf32>
    %361 = vector.shape_cast %360 : vector<1x2x128xf32> to vector<2x128xf32>
    %362 = arith.addf %358, %352 : vector<2x128xf32>
    %363 = arith.addf %361, %355 : vector<2x128xf32>
    %364 = tpu.concatenate %362, %363 in 0 : vector<2x128xf32>, vector<2x128xf32> -> vector<4x128xf32>
    %365 = vector.extract_strided_slice %364 {offsets = [0, 0], sizes = [4, 32], strides = [1, 1]} : vector<4x128xf32> to vector<4x32xf32>
    %366 = arith.negf %365 : vector<4x32xf32>
    %367 = math.exp %366 : vector<4x32xf32>
    %cst_136 = arith.constant 1.000000e+00 : f32
    %368 = vector.broadcast %cst_136 : f32 to vector<4x32xf32>
    %369 = arith.addf %368, %367 : vector<4x32xf32>
    %370 = arith.divf %368, %369 : vector<4x32xf32>
    %371 = vector.extract_strided_slice %364 {offsets = [0, 32], sizes = [4, 32], strides = [1, 1]} : vector<4x128xf32> to vector<4x32xf32>
    %372 = arith.negf %371 : vector<4x32xf32>
    %373 = math.exp %372 : vector<4x32xf32>
    %cst_137 = arith.constant 1.000000e+00 : f32
    %374 = vector.broadcast %cst_137 : f32 to vector<4x32xf32>
    %375 = arith.addf %374, %373 : vector<4x32xf32>
    %376 = arith.divf %374, %375 : vector<4x32xf32>
    %377 = vector.extract_strided_slice %364 {offsets = [0, 64], sizes = [4, 32], strides = [1, 1]} : vector<4x128xf32> to vector<4x32xf32>
    %378 = math.tanh %377 : vector<4x32xf32>
    %379 = vector.extract_strided_slice %364 {offsets = [0, 96], sizes = [4, 32], strides = [1, 1]} : vector<4x128xf32> to vector<4x32xf32>
    %380 = arith.negf %379 : vector<4x32xf32>
    %381 = math.exp %380 : vector<4x32xf32>
    %cst_138 = arith.constant 1.000000e+00 : f32
    %382 = vector.broadcast %cst_138 : f32 to vector<4x32xf32>
    %383 = arith.addf %382, %381 : vector<4x32xf32>
    %384 = arith.divf %382, %383 : vector<4x32xf32>
    %385 = arith.mulf %376, %348 : vector<4x32xf32>
    %386 = arith.mulf %370, %378 : vector<4x32xf32>
    %387 = arith.addf %385, %386 : vector<4x32xf32>
    %388 = math.tanh %387 : vector<4x32xf32>
    %389 = arith.mulf %384, %388 : vector<4x32xf32>
    %390 = arith.index_cast %c5_i32 : i32 to index
    %c0_139 = arith.constant 0 : index
    %c0_140 = arith.constant 0 : index
    %391 = vector.load %arg2[%390, %c0_139, %c0_140] : memref<8x4x1xf32, #tpu.memory_space<vmem>>, vector<1x4x1xf32>
    %392 = vector.shape_cast %391 : vector<1x4x1xf32> to vector<4x1xf32>
    %cst_141 = arith.constant 0.000000e+00 : f32
    %393 = vector.broadcast %cst_141 : f32 to vector<4x1xf32>
    %394 = arith.cmpf ogt, %392, %393 : vector<4x1xf32>
    %395 = vector.broadcast %392 : vector<4x1xf32> to vector<4x32xf32>
    %396 = arith.mulf %389, %395 : vector<4x32xf32>
    %397 = vector.extract_strided_slice %396 {offsets = [0, 0], sizes = [2, 32], strides = [1, 1]} : vector<4x32xf32> to vector<2x32xf32>
    %c2_i32_142 = arith.constant 2 : i32
    %398 = arith.muli %c5_i32, %c2_i32_142 : i32
    %399 = arith.index_cast %398 : i32 to index
    %c0_143 = arith.constant 0 : index
    %400 = vector.load %arg11[%399, %c0_143] : memref<16x64xf32, #tpu.memory_space<vmem>>, vector<2x32xf32>
    tpu.vector_store %arg11[%399, %c0_143], %397 {strides = array<i32>} : memref<16x64xf32, #tpu.memory_space<vmem>>, vector<2x32xf32>,
    %401 = vector.extract_strided_slice %396 {offsets = [2, 0], sizes = [2, 32], strides = [1, 1]} : vector<4x32xf32> to vector<2x32xf32>
    %c2_i32_144 = arith.constant 2 : i32
    %402 = arith.muli %349, %c2_i32_144 : i32
    %403 = arith.index_cast %402 : i32 to index
    %c32_145 = arith.constant 32 : index
    %404 = vector.load %arg11[%403, %c32_145] : memref<16x64xf32, #tpu.memory_space<vmem>>, vector<2x32xf32>
    tpu.vector_store %arg11[%403, %c32_145], %401 {strides = array<i32>} : memref<16x64xf32, #tpu.memory_space<vmem>>, vector<2x32xf32>,
    %405 = vector.shape_cast %394 : vector<4x1xi1> to vector<4x1xi1>
    %406 = vector.broadcast %405 : vector<4x1xi1> to vector<4x32xi1>
    %407 = arith.select %406, %389, %345 : vector<4x32xi1>, vector<4x32xf32>
    %408 = vector.shape_cast %394 : vector<4x1xi1> to vector<4x1xi1>
    %409 = vector.broadcast %408 : vector<4x1xi1> to vector<4x32xi1>
    %410 = arith.select %409, %387, %348 : vector<4x32xi1>, vector<4x32xf32>
    %c6_i32 = arith.constant 6 : i32
    %c7_i32_146 = arith.constant 7 : i32
    %411 = arith.subi %c7_i32_146, %c6_i32 : i32
    %412 = vector.extract_strided_slice %407 {offsets = [0, 0], sizes = [2, 32], strides = [1, 1]} : vector<4x32xf32> to vector<2x32xf32>
    %c0_147 = arith.constant 0 : index
    %c0_148 = arith.constant 0 : index
    %413 = vector.load %arg5[%c0_147, %c0_148] : memref<32x128xf32, #tpu.memory_space<vmem>>, vector<32x128xf32>
    %cst_149 = arith.constant dense<0.000000e+00> : vector<2x128xf32>
    %414 = tpu.matmul %412, %413, %cst_149 {dimension_numbers = #tpu.dot_dimension_numbers<[1], [0], [0], [1], [0, 0, 1, 1], [], []>} : vector<2x32xf32>, vector<32x128xf32>, vector<2x128xf32> -> vector<2x128xf32>
    %415 = vector.extract_strided_slice %407 {offsets = [2, 0], sizes = [2, 32], strides = [1, 1]} : vector<4x32xf32> to vector<2x32xf32>
    %c0_150 = arith.constant 0 : index
    %c0_151 = arith.constant 0 : index
    %416 = vector.load %arg6[%c0_150, %c0_151] : memref<32x128xf32, #tpu.memory_space<vmem>>, vector<32x128xf32>
    %cst_152 = arith.constant dense<0.000000e+00> : vector<2x128xf32>
    %417 = tpu.matmul %415, %416, %cst_152 {dimension_numbers = #tpu.dot_dimension_numbers<[1], [0], [0], [1], [0, 0, 1, 1], [], []>} : vector<2x32xf32>, vector<32x128xf32>, vector<2x128xf32> -> vector<2x128xf32>
    %418 = arith.index_cast %c6_i32 : i32 to index
    %c0_153 = arith.constant 0 : index
    %c0_154 = arith.constant 0 : index
    %419 = vector.load %arg10[%418, %c0_153, %c0_154] : memref<8x2x256xf32, #tpu.memory_space<vmem>>, vector<1x2x128xf32>
    %420 = vector.shape_cast %419 : vector<1x2x128xf32> to vector<2x128xf32>
    %421 = arith.index_cast %411 : i32 to index
    %c0_155 = arith.constant 0 : index
    %c128_156 = arith.constant 128 : index
    %422 = vector.load %arg10[%421, %c0_155, %c128_156] : memref<8x2x256xf32, #tpu.memory_space<vmem>>, vector<1x2x128xf32>
    %423 = vector.shape_cast %422 : vector<1x2x128xf32> to vector<2x128xf32>
    %424 = arith.addf %420, %414 : vector<2x128xf32>
    %425 = arith.addf %423, %417 : vector<2x128xf32>
    %426 = tpu.concatenate %424, %425 in 0 : vector<2x128xf32>, vector<2x128xf32> -> vector<4x128xf32>
    %427 = vector.extract_strided_slice %426 {offsets = [0, 0], sizes = [4, 32], strides = [1, 1]} : vector<4x128xf32> to vector<4x32xf32>
    %428 = arith.negf %427 : vector<4x32xf32>
    %429 = math.exp %428 : vector<4x32xf32>
    %cst_157 = arith.constant 1.000000e+00 : f32
    %430 = vector.broadcast %cst_157 : f32 to vector<4x32xf32>
    %431 = arith.addf %430, %429 : vector<4x32xf32>
    %432 = arith.divf %430, %431 : vector<4x32xf32>
    %433 = vector.extract_strided_slice %426 {offsets = [0, 32], sizes = [4, 32], strides = [1, 1]} : vector<4x128xf32> to vector<4x32xf32>
    %434 = arith.negf %433 : vector<4x32xf32>
    %435 = math.exp %434 : vector<4x32xf32>
    %cst_158 = arith.constant 1.000000e+00 : f32
    %436 = vector.broadcast %cst_158 : f32 to vector<4x32xf32>
    %437 = arith.addf %436, %435 : vector<4x32xf32>
    %438 = arith.divf %436, %437 : vector<4x32xf32>
    %439 = vector.extract_strided_slice %426 {offsets = [0, 64], sizes = [4, 32], strides = [1, 1]} : vector<4x128xf32> to vector<4x32xf32>
    %440 = math.tanh %439 : vector<4x32xf32>
    %441 = vector.extract_strided_slice %426 {offsets = [0, 96], sizes = [4, 32], strides = [1, 1]} : vector<4x128xf32> to vector<4x32xf32>
    %442 = arith.negf %441 : vector<4x32xf32>
    %443 = math.exp %442 : vector<4x32xf32>
    %cst_159 = arith.constant 1.000000e+00 : f32
    %444 = vector.broadcast %cst_159 : f32 to vector<4x32xf32>
    %445 = arith.addf %444, %443 : vector<4x32xf32>
    %446 = arith.divf %444, %445 : vector<4x32xf32>
    %447 = arith.mulf %438, %410 : vector<4x32xf32>
    %448 = arith.mulf %432, %440 : vector<4x32xf32>
    %449 = arith.addf %447, %448 : vector<4x32xf32>
    %450 = math.tanh %449 : vector<4x32xf32>
    %451 = arith.mulf %446, %450 : vector<4x32xf32>
    %452 = arith.index_cast %c6_i32 : i32 to index
    %c0_160 = arith.constant 0 : index
    %c0_161 = arith.constant 0 : index
    %453 = vector.load %arg2[%452, %c0_160, %c0_161] : memref<8x4x1xf32, #tpu.memory_space<vmem>>, vector<1x4x1xf32>
    %454 = vector.shape_cast %453 : vector<1x4x1xf32> to vector<4x1xf32>
    %cst_162 = arith.constant 0.000000e+00 : f32
    %455 = vector.broadcast %cst_162 : f32 to vector<4x1xf32>
    %456 = arith.cmpf ogt, %454, %455 : vector<4x1xf32>
    %457 = vector.broadcast %454 : vector<4x1xf32> to vector<4x32xf32>
    %458 = arith.mulf %451, %457 : vector<4x32xf32>
    %459 = vector.extract_strided_slice %458 {offsets = [0, 0], sizes = [2, 32], strides = [1, 1]} : vector<4x32xf32> to vector<2x32xf32>
    %c2_i32_163 = arith.constant 2 : i32
    %460 = arith.muli %c6_i32, %c2_i32_163 : i32
    %461 = arith.index_cast %460 : i32 to index
    %c0_164 = arith.constant 0 : index
    %462 = vector.load %arg11[%461, %c0_164] : memref<16x64xf32, #tpu.memory_space<vmem>>, vector<2x32xf32>
    tpu.vector_store %arg11[%461, %c0_164], %459 {strides = array<i32>} : memref<16x64xf32, #tpu.memory_space<vmem>>, vector<2x32xf32>,
    %463 = vector.extract_strided_slice %458 {offsets = [2, 0], sizes = [2, 32], strides = [1, 1]} : vector<4x32xf32> to vector<2x32xf32>
    %c2_i32_165 = arith.constant 2 : i32
    %464 = arith.muli %411, %c2_i32_165 : i32
    %465 = arith.index_cast %464 : i32 to index
    %c32_166 = arith.constant 32 : index
    %466 = vector.load %arg11[%465, %c32_166] : memref<16x64xf32, #tpu.memory_space<vmem>>, vector<2x32xf32>
    tpu.vector_store %arg11[%465, %c32_166], %463 {strides = array<i32>} : memref<16x64xf32, #tpu.memory_space<vmem>>, vector<2x32xf32>,
    %467 = vector.shape_cast %456 : vector<4x1xi1> to vector<4x1xi1>
    %468 = vector.broadcast %467 : vector<4x1xi1> to vector<4x32xi1>
    %469 = arith.select %468, %451, %407 : vector<4x32xi1>, vector<4x32xf32>
    %470 = vector.shape_cast %456 : vector<4x1xi1> to vector<4x1xi1>
    %471 = vector.broadcast %470 : vector<4x1xi1> to vector<4x32xi1>
    %472 = arith.select %471, %449, %410 : vector<4x32xi1>, vector<4x32xf32>
    %c7_i32_167 = arith.constant 7 : i32
    %c7_i32_168 = arith.constant 7 : i32
    %473 = arith.subi %c7_i32_168, %c7_i32_167 : i32
    %474 = vector.extract_strided_slice %469 {offsets = [0, 0], sizes = [2, 32], strides = [1, 1]} : vector<4x32xf32> to vector<2x32xf32>
    %c0_169 = arith.constant 0 : index
    %c0_170 = arith.constant 0 : index
    %475 = vector.load %arg5[%c0_169, %c0_170] : memref<32x128xf32, #tpu.memory_space<vmem>>, vector<32x128xf32>
    %cst_171 = arith.constant dense<0.000000e+00> : vector<2x128xf32>
    %476 = tpu.matmul %474, %475, %cst_171 {dimension_numbers = #tpu.dot_dimension_numbers<[1], [0], [0], [1], [0, 0, 1, 1], [], []>} : vector<2x32xf32>, vector<32x128xf32>, vector<2x128xf32> -> vector<2x128xf32>
    %477 = vector.extract_strided_slice %469 {offsets = [2, 0], sizes = [2, 32], strides = [1, 1]} : vector<4x32xf32> to vector<2x32xf32>
    %c0_172 = arith.constant 0 : index
    %c0_173 = arith.constant 0 : index
    %478 = vector.load %arg6[%c0_172, %c0_173] : memref<32x128xf32, #tpu.memory_space<vmem>>, vector<32x128xf32>
    %cst_174 = arith.constant dense<0.000000e+00> : vector<2x128xf32>
    %479 = tpu.matmul %477, %478, %cst_174 {dimension_numbers = #tpu.dot_dimension_numbers<[1], [0], [0], [1], [0, 0, 1, 1], [], []>} : vector<2x32xf32>, vector<32x128xf32>, vector<2x128xf32> -> vector<2x128xf32>
    %480 = arith.index_cast %c7_i32_167 : i32 to index
    %c0_175 = arith.constant 0 : index
    %c0_176 = arith.constant 0 : index
    %481 = vector.load %arg10[%480, %c0_175, %c0_176] : memref<8x2x256xf32, #tpu.memory_space<vmem>>, vector<1x2x128xf32>
    %482 = vector.shape_cast %481 : vector<1x2x128xf32> to vector<2x128xf32>
    %483 = arith.index_cast %473 : i32 to index
    %c0_177 = arith.constant 0 : index
    %c128_178 = arith.constant 128 : index
    %484 = vector.load %arg10[%483, %c0_177, %c128_178] : memref<8x2x256xf32, #tpu.memory_space<vmem>>, vector<1x2x128xf32>
    %485 = vector.shape_cast %484 : vector<1x2x128xf32> to vector<2x128xf32>
    %486 = arith.addf %482, %476 : vector<2x128xf32>
    %487 = arith.addf %485, %479 : vector<2x128xf32>
    %488 = tpu.concatenate %486, %487 in 0 : vector<2x128xf32>, vector<2x128xf32> -> vector<4x128xf32>
    %489 = vector.extract_strided_slice %488 {offsets = [0, 0], sizes = [4, 32], strides = [1, 1]} : vector<4x128xf32> to vector<4x32xf32>
    %490 = arith.negf %489 : vector<4x32xf32>
    %491 = math.exp %490 : vector<4x32xf32>
    %cst_179 = arith.constant 1.000000e+00 : f32
    %492 = vector.broadcast %cst_179 : f32 to vector<4x32xf32>
    %493 = arith.addf %492, %491 : vector<4x32xf32>
    %494 = arith.divf %492, %493 : vector<4x32xf32>
    %495 = vector.extract_strided_slice %488 {offsets = [0, 32], sizes = [4, 32], strides = [1, 1]} : vector<4x128xf32> to vector<4x32xf32>
    %496 = arith.negf %495 : vector<4x32xf32>
    %497 = math.exp %496 : vector<4x32xf32>
    %cst_180 = arith.constant 1.000000e+00 : f32
    %498 = vector.broadcast %cst_180 : f32 to vector<4x32xf32>
    %499 = arith.addf %498, %497 : vector<4x32xf32>
    %500 = arith.divf %498, %499 : vector<4x32xf32>
    %501 = vector.extract_strided_slice %488 {offsets = [0, 64], sizes = [4, 32], strides = [1, 1]} : vector<4x128xf32> to vector<4x32xf32>
    %502 = math.tanh %501 : vector<4x32xf32>
    %503 = vector.extract_strided_slice %488 {offsets = [0, 96], sizes = [4, 32], strides = [1, 1]} : vector<4x128xf32> to vector<4x32xf32>
    %504 = arith.negf %503 : vector<4x32xf32>
    %505 = math.exp %504 : vector<4x32xf32>
    %cst_181 = arith.constant 1.000000e+00 : f32
    %506 = vector.broadcast %cst_181 : f32 to vector<4x32xf32>
    %507 = arith.addf %506, %505 : vector<4x32xf32>
    %508 = arith.divf %506, %507 : vector<4x32xf32>
    %509 = arith.mulf %500, %472 : vector<4x32xf32>
    %510 = arith.mulf %494, %502 : vector<4x32xf32>
    %511 = arith.addf %509, %510 : vector<4x32xf32>
    %512 = math.tanh %511 : vector<4x32xf32>
    %513 = arith.mulf %508, %512 : vector<4x32xf32>
    %514 = arith.index_cast %c7_i32_167 : i32 to index
    %c0_182 = arith.constant 0 : index
    %c0_183 = arith.constant 0 : index
    %515 = vector.load %arg2[%514, %c0_182, %c0_183] : memref<8x4x1xf32, #tpu.memory_space<vmem>>, vector<1x4x1xf32>
    %516 = vector.shape_cast %515 : vector<1x4x1xf32> to vector<4x1xf32>
    %cst_184 = arith.constant 0.000000e+00 : f32
    %517 = vector.broadcast %cst_184 : f32 to vector<4x1xf32>
    %518 = arith.cmpf ogt, %516, %517 : vector<4x1xf32>
    %519 = vector.broadcast %516 : vector<4x1xf32> to vector<4x32xf32>
    %520 = arith.mulf %513, %519 : vector<4x32xf32>
    %521 = vector.extract_strided_slice %520 {offsets = [0, 0], sizes = [2, 32], strides = [1, 1]} : vector<4x32xf32> to vector<2x32xf32>
    %c2_i32_185 = arith.constant 2 : i32
    %522 = arith.muli %c7_i32_167, %c2_i32_185 : i32
    %523 = arith.index_cast %522 : i32 to index
    %c0_186 = arith.constant 0 : index
    %524 = vector.load %arg11[%523, %c0_186] : memref<16x64xf32, #tpu.memory_space<vmem>>, vector<2x32xf32>
    tpu.vector_store %arg11[%523, %c0_186], %521 {strides = array<i32>} : memref<16x64xf32, #tpu.memory_space<vmem>>, vector<2x32xf32>,
    %525 = vector.extract_strided_slice %520 {offsets = [2, 0], sizes = [2, 32], strides = [1, 1]} : vector<4x32xf32> to vector<2x32xf32>
    %c2_i32_187 = arith.constant 2 : i32
    %526 = arith.muli %473, %c2_i32_187 : i32
    %527 = arith.index_cast %526 : i32 to index
    %c32_188 = arith.constant 32 : index
    %528 = vector.load %arg11[%527, %c32_188] : memref<16x64xf32, #tpu.memory_space<vmem>>, vector<2x32xf32>
    tpu.vector_store %arg11[%527, %c32_188], %525 {strides = array<i32>} : memref<16x64xf32, #tpu.memory_space<vmem>>, vector<2x32xf32>,
    %529 = vector.shape_cast %518 : vector<4x1xi1> to vector<4x1xi1>
    %530 = vector.broadcast %529 : vector<4x1xi1> to vector<4x32xi1>
    %531 = arith.select %530, %513, %469 : vector<4x32xi1>, vector<4x32xf32>
    %532 = vector.shape_cast %518 : vector<4x1xi1> to vector<4x1xi1>
    %533 = vector.broadcast %532 : vector<4x1xi1> to vector<4x32xi1>
    %534 = arith.select %533, %511, %472 : vector<4x32xi1>, vector<4x32xf32>
    %c8_i32 = arith.constant 8 : i32
    %c0_189 = arith.constant 0 : index
    %c0_190 = arith.constant 0 : index
    %535 = vector.load %arg11[%c0_189, %c0_190] : memref<16x64xf32, #tpu.memory_space<vmem>>, vector<16x64xf32>
    %c0_191 = arith.constant 0 : index
    %c0_192 = arith.constant 0 : index
    %536 = vector.load %arg7[%c0_191, %c0_192] : memref<64x128xf32, #tpu.memory_space<vmem>>, vector<64x128xf32>
    %cst_193 = arith.constant dense<0.000000e+00> : vector<16x128xf32>
    %537 = tpu.matmul %535, %536, %cst_193 {dimension_numbers = #tpu.dot_dimension_numbers<[1], [0], [0], [1], [0, 0, 1, 1], [], []>} : vector<16x64xf32>, vector<64x128xf32>, vector<16x128xf32> -> vector<16x128xf32>
    %c0_194 = arith.constant 0 : index
    %c0_195 = arith.constant 0 : index
    %538 = vector.load %arg8[%c0_194, %c0_195] : memref<1x128xf32, #tpu.memory_space<vmem>>, vector<1x128xf32>
    %539 = vector.broadcast %538 : vector<1x128xf32> to vector<16x128xf32>
    %540 = arith.addf %537, %539 : vector<16x128xf32>
    %c0_196 = arith.constant 0 : index
    %c0_197 = arith.constant 0 : index
    %541 = vector.load %arg9[%c0_196, %c0_197] : memref<16x128xf32, #tpu.memory_space<vmem>>, vector<16x128xf32>
    tpu.vector_store %arg9[%c0_196, %c0_197], %540 {strides = array<i32>} : memref<16x128xf32, #tpu.memory_space<vmem>>, vector<16x128xf32>,
    return
  }
  func.func @transform_0(%arg0: i32) -> (i32, i32) {
    %c0_i32 = arith.constant 0 : i32
    %c0_i32_0 = arith.constant 0 : i32
    %c0_i32_1 = arith.constant 0 : i32
    return %c0_i32, %c0_i32_0 : i32, i32
  }
  func.func @transform_1(%arg0: i32) -> (i32, i32, i32) {
    %c0_i32 = arith.constant 0 : i32
    %c0_i32_0 = arith.constant 0 : i32
    %c0_i32_1 = arith.constant 0 : i32
    %c0_i32_2 = arith.constant 0 : i32
    return %c0_i32, %c0_i32_0, %c0_i32_1 : i32, i32, i32
  }
  func.func @transform_2(%arg0: i32) -> (i32, i32) {
    %c0_i32 = arith.constant 0 : i32
    %c0_i32_0 = arith.constant 0 : i32
    %c0_i32_1 = arith.constant 0 : i32
    return %c0_i32, %c0_i32_0 : i32, i32
  }
  func.func @transform_3(%arg0: i32) -> (i32, i32) {
    %c0_i32 = arith.constant 0 : i32
    %c0_i32_0 = arith.constant 0 : i32
    %c0_i32_1 = arith.constant 0 : i32
    return %c0_i32, %c0_i32_0 : i32, i32
  }
  func.func @transform_4(%arg0: i32) -> (i32, i32) {
    %c0_i32 = arith.constant 0 : i32
    %c0_i32_0 = arith.constant 0 : i32
    %c0_i32_1 = arith.constant 0 : i32
    return %c0_i32, %c0_i32_0 : i32, i32
  }
  func.func @transform_5(%arg0: i32) -> (i32, i32) {
    %c0_i32 = arith.constant 0 : i32
    %c0_i32_0 = arith.constant 0 : i32
    %c0_i32_1 = arith.constant 0 : i32
    return %c0_i32, %c0_i32_0 : i32, i32
  }
  func.func @transform_6(%arg0: i32) -> (i32, i32) {
    %c0_i32 = arith.constant 0 : i32
    %c0_i32_0 = arith.constant 0 : i32
    %c0_i32_1 = arith.constant 0 : i32
    return %c0_i32, %c0_i32_0 : i32, i32
  }
  func.func @transform_7(%arg0: i32) -> (i32, i32) {
    %c0_i32 = arith.constant 0 : i32
    %c0_i32_0 = arith.constant 0 : i32
    %c0_i32_1 = arith.constant 0 : i32
    return %c0_i32, %c0_i32_0 : i32, i32
  }
  func.func @transform_8(%arg0: i32) -> (i32, i32) {
    %c0_i32 = arith.constant 0 : i32
    %c0_i32_0 = arith.constant 0 : i32
    %c0_i32_1 = arith.constant 0 : i32
    return %c0_i32, %c0_i32_0 : i32, i32
  }
}

</mosaic_0001>

<bundles_post_ra>
// kernel: slot_tagger_forward.1
= control target key start
LH: loop header
LB: loop body
LE: loop exit
PB: predicated region body
PF: predicated region fallthrough
CT: control target
= control target key end

     0   :  { %v2478_v3 = vmov 0.0   ;;  %vm2479_vm0 = vmmov 0   ;;  %vm67_vm1 = vcmask 785408   ;;  %v2480_v35 = vmov 0   ;;  %s2483_s9 = smov 32   ;;  %s3127_s2 = inlined_call_operand.vmem [shape: f32[96,256], index: 2, kind: input, shape index: {}]   ;;  %s3128_s4 = inlined_call_operand.vmem [shape: f32[32,128], index: 4, kind: input, shape index: {}]   ;;  %s3129_s5 = inlined_call_operand.vmem [shape: f32[32,128], index: 5, kind: input, shape index: {}]   ;;  %s3130_s0 = inlined_call_operand.vmem [shape: f32[16,96], index: 0, kind: input, shape index: {}]   ;;  %s3131_s1 = inlined_call_operand.vmem [shape: f32[8,4,1], index: 1, kind: input, shape index: {}]   ;;  %s3132_s3 = inlined_call_operand.vmem [shape: f32[1,256], index: 3, kind: input, shape index: {}]   ;;  %s3133_s6 = inlined_call_operand.vmem [shape: f32[64,128], index: 6, kind: input, shape index: {}]   ;;  %s3134_s7 = inlined_call_operand.vmem [shape: f32[1,128], index: 7, kind: input, shape index: {}]   ;;  %s3135_s8 = inlined_call_operand.vmem [shape: f32[16,128], index: 8, kind: output, shape index: {}]  }
   0x1   :  { %v54_v0 = vld [vmem:[%s3127_s2 + $0xb8] sm:$0xff]  ;;  %v53_v1 = vld [vmem:[%s3127_s2 + $0xb0] sm:$0xff]  ;;  %v52_v2 = vld [vmem:[%s3127_s2 + $0xa8] sm:$0xff]  ;;  %138 = vmatprep.mubr.f32.mxu0 %v2478_v3  ;;  %2211 = vmatprep.subr.mxu1 %v2478_v3  ;;  %v57_v38 = vlaneseq  ;;  %v2481_v43 = vmov 1983009808   ;;  %vm380_vm3 = vcmask 1041408  }
   0x2   :  { %82 = vmatprep.subr.mxu0 %v54_v0  ;;  %v51_v4 = vld [vmem:[%s3127_s2 + $0xa0] sm:$0xff]  ;;  %2219 = vmatprep.mubr.msk.f32.mxu1 %vm2479_vm0, %v2478_v3  ;;  %v50_v5 = vld [vmem:[%s3127_s2 + $0x98] sm:$0xff]  ;;  %v49_v6 = vld [vmem:[%s3127_s2 + $0x90] sm:$0xff]  ;;  %v155_v44 = vunpack.c.l.s4 %v2481_v43  ;;  %vm218_vm5 = vcmask 261120  }
   0x3   :  { %83 = vmatpush1.msra.mxu0 %v53_v1  ;;  %v48_v7 = vld [vmem:[%s3127_s2 + $0x88] sm:$0xff]  ;;  %v47_v8 = vld [vmem:[%s3127_s2 + $0x80] sm:$0xff]  ;;  %v46_v9 = vld [vmem:[%s3127_s2 + $0x78] sm:$0xff]  ;;  %2412 = vset.pattern.permute.xlu1 %v2480_v35  ;;  %v58_v39 = vshrl.u32 %v57_v38, 7 }
   0x4   :  { %84 = vmatprep.subr.mxu0 %v52_v2  ;;  %v45_v10 = vld [vmem:[%s3127_s2 + $0x70] sm:$0xff]  ;;  %v44_v11 = vld [vmem:[%s3127_s2 + $0x68] sm:$0xff]  ;;  %v2569_v12 = vld [vmem:[%s3128_s4 + $0x18] sm:$0xff]  ;;  %2413 = vset.pattern.permute.xlu0 %v2480_v35  ;;  %v156_v48 = vunpack.c.0.s8 %v155_v44 }
   0x5   :  { %85 = vmatpush1.msra.mxu0 %v51_v4  ;;  %v43_v13 = vld [vmem:[%s3127_s2 + $0x60] sm:$0xff]  ;;  %2212 = vmatpush3.msra.mxu1 %v2569_v12  ;;  %v2578_v14 = vld [vmem:[%s3128_s4 + $0x10] sm:$0xff]  ;;  %v42_v15 = vld [vmem:[%s3127_s2 + $0x58] sm:$0xff]  ;;  %v59_v42 = vsub.s32 0, %v58_v39  ;;  %v63_v45 = vsub.s32 1, %v58_v39 }
   0x6   :  { %86 = vmatprep.subr.mxu0 %v50_v5  ;;  %2213 = vmatprep.subr.mxu1 %v2478_v3  ;;  %v2587_v16 = vld [vmem:[%s3128_s4 + $0x8] sm:$0xff]  ;;  %v41_v17 = vld [vmem:[%s3127_s2 + $0x50] sm:$0xff]  ;;  %v2600_v19 = vld [vmem:[%s3128_s4] sm:$0xff]  ;;  %v2705_v54 = vsub.s32 %v156_v48, %v58_v39 }
   0x7   :  { %87 = vmatpush1.msra.mxu0 %v49_v6  ;;  %2214 = vmatpush3.msra.mxu1 %v2578_v14  ;;  %v40_v18 = vld [vmem:[%s3127_s2 + $0x48] sm:$0xff]  ;;  %v39_v20 = vld [vmem:[%s3127_s2 + $0x40] sm:$0xff]  ;;  %v38_v21 = vld [vmem:[%s3127_s2 + $0x38] sm:$0xff] }
   0x8   :  { %88 = vmatprep.subr.mxu0 %v48_v7  ;;  %2215 = vmatprep.subr.mxu1 %v2478_v3  ;;  %v37_v22 = vld [vmem:[%s3127_s2 + $0x30] sm:$0xff]  ;;  %v2617_v23 = vld [vmem:[%s3129_s5 + $0x18] sm:$0xff]  ;;  %v36_v24 = vld [vmem:[%s3127_s2 + $0x28] sm:$0xff] }
   0x9   :  { %89 = vmatpush1.msra.mxu0 %v47_v8  ;;  %2216 = vmatpush3.msra.mxu1 %v2587_v16  ;;  %v35_v25 = vld [vmem:[%s3127_s2 + $0x20] sm:$0xff]  ;;  %v2630_v26 = vld [vmem:[%s3129_s5 + $0x10] sm:$0xff]  ;;  %v34_v27 = vld [vmem:[%s3127_s2 + $0x18] sm:$0xff] }
   0xa   :  { %90 = vmatprep.subr.mxu0 %v46_v9  ;;  %2217 = vmatprep.subr.mxu1 %v2478_v3  ;;  %v33_v28 = vld [vmem:[%s3127_s2 + $0x10] sm:$0xff]  ;;  %v2643_v29 = vld [vmem:[%s3129_s5 + $0x8] sm:$0xff]  ;;  %v31_v31 = vld [vmem:[%s3127_s2] sm:$0xff] }
   0xb   :  { %91 = vmatpush1.msra.mxu0 %v45_v10  ;;  %2218 = vmatpush3.msra.mxu1 %v2600_v19  ;;  %v32_v30 = vld [vmem:[%s3127_s2 + $0x8] sm:$0xff]  ;;  %v2656_v32 = vld [vmem:[%s3129_s5] sm:$0xff] }
   0xc   :  { %92 = vmatprep.subr.mxu0 %v44_v11  ;;  %2222 = vmatprep.subr.mxu1 %v2478_v3  ;;  %v29_v33 = vld [vmem:[%s3130_s0] sm:$0xff]  ;;  %v30_v34 = vld [vmem:[%s3130_s0 + $0x8] sm:$0xff] }
   0xd   :  { %93 = vmatpush1.msra.mxu0 %v43_v13  ;;  %2220 = vmatmul.mubr.f32.vlgmr.msra.gmra.mxu1 %v2478_v3  ;;  %v2697_v36 = vld [vmem:[%s3131_s1] sm:$0xf] }
   0xe   :  { %94 = vmatprep.subr.mxu0 %v42_v15  ;;  %2223 = vmatpush3.msra.mxu1 %v2617_v23  ;;  %vm407_vm2 = vcmp.gt.f32.partialorder %v2697_v36, 0.0  ;;  %v55_v46 = vld [vmem:[%s3132_s3] sm:$0x3]  ;;  %s2482_s3 = smov 64  }
   0xf   :  { %95 = vmatpush1.msra.mxu0 %v41_v17  ;;  %2224 = vmatprep.subr.mxu1 %v2478_v3  ;;  %v425_v37 = vsel %vm407_vm2, 1, %v2480_v35  ;;  %v60_v47 = vrot.slane %v55_v46, %v59_v42  ;;  %v64_v49 = vrot.slane %v55_v46, %v63_v45  ;;  %vm418_vm2 = vcmask 254976  }
  0x10   :  { %96 = vmatprep.subr.mxu0 %v40_v18  ;;  %2225 = vmatpush3.msra.mxu1 %v2630_v26 }
  0x11   :  { %97 = vmatpush1.msra.mxu0 %v39_v20  ;;  %2226 = vmatprep.subr.mxu1 %v2478_v3 }
  0x12   :  { %98 = vmatprep.subr.mxu0 %v38_v21  ;;  %2227 = vmatpush3.msra.mxu1 %v2643_v29 }
  0x13   :  { %99 = vmatpush1.msra.mxu0 %v37_v22  ;;  %2228 = vmatprep.subr.mxu1 %v2478_v3 }
  0x14   :  { %100 = vmatprep.subr.mxu0 %v36_v24  ;;  %2229 = vmatpush3.msra.mxu1 %v2656_v32 }
  0x15   :  { %101 = vmatpush1.msra.mxu0 %v35_v25  ;;  %2230 = vmatprep.mubr.msk.f32.mxu1 %vm2479_vm0, %v2478_v3 }
  0x16   :  { %102 = vmatprep.subr.mxu0 %v34_v27  ;;  %2231 = vmatmul.mubr.f32.vlgmr.msra.gmra.mxu1 %v2478_v3 }
  0x17   :  { %103 = vmatpush1.msra.mxu0 %v33_v28  ;;  %2233 = vmatprep.subr.mxu1 %v2478_v3 }
  0x18   :  { %104 = vmatprep.subr.mxu0 %v32_v30  ;;  %2234 = vmatpush3.msra.mxu1 %v2569_v12 }
  0x19   :  { %105 = vmatpush1.msra.mxu0 %v31_v31  ;;  %2235 = vmatprep.subr.mxu1 %v2478_v3 }
  0x1a   :  { %2083 = vmatmul.mubr.msk.f32.vlgmr.msra.gmra.mxu0 %vm67_vm1, %v29_v33  ;;  %2244 = vmatprep.subr.mxu0 %v2478_v3 }
  0x1b   :  { %144 = vmatprep.mubr.f32.mxu0 %v2478_v3  ;;  %2245 = vmatpush3.msra.mxu0 %v2617_v23 }
  0x1c   :  { %2236 = vmatpush3.msra.mxu1 %v2578_v14  ;;  %2246 = vmatprep.subr.mxu0 %v2478_v3 }
  0x1d   :  { %2237 = vmatprep.subr.mxu1 %v2478_v3  ;;  %2247 = vmatpush3.msra.mxu0 %v2630_v26 }
  0x1e   :  { %2084 = vmatmul.mubr.msk.f32.gmra.mxu0 %vm67_vm1, %v30_v34  ;;  %2238 = vmatpush3.msra.mxu1 %v2587_v16 }
  0x1f   :  { %2248 = vmatprep.subr.mxu0 %v2478_v3  ;;  %2239 = vmatprep.subr.mxu1 %v2478_v3 }
  0x20   :  { %2249 = vmatpush3.msra.mxu0 %v2643_v29  ;;  %2240 = vmatpush3.msra.mxu1 %v2600_v19 }
  0x21   :  { %2241 = vmatprep.mubr.msk.f32.mxu1 %vm2479_vm0, %v2478_v3  ;;  %2250 = vmatprep.subr.mxu0 %v2478_v3 }
  0x22   :  { %2252 = vmatprep.mubr.msk.f32.mxu0 %vm2479_vm0, %v2478_v3  ;;  %2251 = vmatpush3.msra.mxu0 %v2656_v32 }
  0x23   :  { %2255 = vmatprep.subr.mxu1 %v2478_v3  ;;  %2266 = vmatprep.subr.mxu0 %v2478_v3 }
  0x24   :  { %427 = vperm.xlu1 %2412, %v425_v37  }
  0x9f   :  { %v428_v38 = vpop.permute.xlu1 %427 }
  0xa0   :  { %vm429_vm4 = vcmp.eq.s32.totalorder %v428_v38, 1 }
  0xcd   :  { %v288_v40 = vpop.f32.mrf.mxu1 }
  0xcf   :  { %v2221_v41 = vpop.f32.mrf.mxu1 }
  0xd6   :  { %v362_v51 = vpop.f32.mrf.mxu1 }
  0xd8   :  { %v2232_v56 = vpop.f32.mrf.mxu1 }
  0xda   :  { %v140_v50 = vpop.f32.mrf.mxu0 }
  0xdb   :  { %v141_v53 = vadd.f32 %v140_v50, %v60_v47 }
  0xdc   :  { %v142_v52 = vpop.f32.mrf.mxu0 }
  0xdd   :  { %v143_v55 = vadd.f32 %v142_v52, %v64_v49 }
  0xde   :  { %v146_v57 = vpop.f32.mrf.mxu0 }
  0xdf   :  { %v153_v58 = vcombine.low %v141_v53, %v143_v55  ;;  %v167_v59 = vcombine.high %v141_v53, %v143_v55  ;;  %v147_v63 = vadd.f32 %v146_v57, %v60_v47  ;;  %v2753_v57 = vld [vmem:[%s3131_s1 + $0x4] sm:$0xf] }
  0xe0   :  { %v148_v60 = vpop.f32.mrf.mxu0  ;;  %vm631_vm6 = vcmp.gt.f32.partialorder %v2753_v57, 0.0 }
  0xe1   :  { %v160_v61 = vrot.slane %v153_v58, %v2705_v54  ;;  %2085 = vst.sshfl [vmem:[#allocation2] sm:$0x33 pattern:$0x76325410] %v153_v58  ;;  %v174_v62 = vrot.slane %v167_v59, %v2705_v54  ;;  %v149_v0 = vadd.f32 %v148_v60, %v64_v49 }
  0xe2   :  { %2086 = vst.sshfl [vmem:[#allocation2 + $0x8] sm:$0x33 pattern:$0x76325410] %v167_v59  ;;  %v647_v59 = vsel %vm631_vm6, 1, %v2480_v35 }
  0xe3   :  { %v163_v1 = vcombine.high %v160_v61, %v160_v61  ;;  %v178_v2 = vcombine.high %v174_v62, %v174_v62  ;;  %v184_v4 = vcombine.low %v147_v63, %v149_v0  ;;  %v199_v5 = vcombine.high %v147_v63, %v149_v0 }
  0xe5   :  { %166 = vst [vmem:[#allocation2 + $0x4] sm:$0xf] %v163_v1  ;;  %181 = vst [vmem:[#allocation2 + $0xc] sm:$0xf] %v178_v2  ;;  %v191_v6 = vrot.slane %v184_v4, %v2705_v54  ;;  %v206_v7 = vrot.slane %v199_v5, %v2705_v54 }
  0xe6   :  { %2087 = vst.sshfl [vmem:[#allocation2 + $0x10] sm:$0x33 pattern:$0x76325410] %v184_v4 }
  0xe7   :  { %2088 = vst.sshfl [vmem:[#allocation2 + $0x18] sm:$0x33 pattern:$0x76325410] %v199_v5  ;;  %v195_v8 = vcombine.high %v191_v6, %v191_v6  ;;  %v210_v9 = vcombine.high %v206_v7, %v206_v7 }
  0xe8   :  { %v366_v13 = vld [vmem:[#allocation2] sm:$0x3] }
  0xe9   :  { %198 = vst [vmem:[#allocation2 + $0x14] sm:$0xf] %v195_v8  ;;  %213 = vst [vmem:[#allocation2 + $0x1c] sm:$0xf] %v210_v9  ;;  %v368_v17 = vadd.f32 %v366_v13, %v288_v40 }
  0xec   :  { %v590_v52 = vld [vmem:[#allocation2 + $0x4] sm:$0x3] }
  0xee   :  { %v591_v48 = vld [vmem:[#allocation2 + $0x1a] sm:$0x3] }
  0xf0   :  { %v367_v10 = vld [vmem:[#allocation2 + $0x1e] sm:$0x3] }
  0xf1   :  { %v369_v11 = vadd.f32 %v367_v10, %v362_v51 }
  0xf3   :  { %v371_v15 = vcombine.low %v369_v11, %v369_v11 }
  0xf5   :  { %v378_v18 = vrot.slane %v371_v15, %v2705_v54 }
  0xf7   :  { %v381_v20 = vsel %vm380_vm3, %v368_v17, %v378_v18 }
  0xf8   :  { %2414 = vtanh.f32 %v381_v20  ;;  %v2089_v22 = vmul.f32 -1.442695, %v381_v20 }
  0xfa   :  { %2416 = vpow2.f32 %v2089_v22  ;;  %v813_v22 = vld [vmem:[#allocation2 + $0x16] sm:$0x3] }
 0x105   :  { %v2415_v21 = vpop.eup %2414 }
 0x106   :  { %391 = vrot.lane.b32.xlu0 %v2415_v21, %s2482_s3 }
 0x107   :  { %v2417_v24 = vpop.eup %2416 }
 0x108   :  { %v385_v25 = vadd.f32 1.0, %v2417_v24 }
 0x10a   :  { %2418 = vrcp.f32 %v385_v25 }
 0x117   :  { %v2419_v27 = vpop.eup %2418 }
 0x118   :  { %v389_v31 = vmul.f32 0.0, %v2419_v27 }
 0x178   :  { %v392_v28 = vpop.permute.xlu0 %391 }
 0x179   :  { %v394_v30 = vmul.f32 %v2419_v27, %v392_v28  ;;  %v812_v28 = vld [vmem:[#allocation2 + $0x8] sm:$0x3] }
 0x17b   :  { %396 = vrot.lane.b32.xlu0 %v394_v30, %s2483_s9 }
 0x1ed   :  { %v397_v33 = vpop.permute.xlu0 %396 }
 0x1ee   :  { %v399_v34 = vadd.f32 %v397_v33, %v389_v31 }
 0x1f0   :  { %2420 = vtanh.f32 %v399_v34  ;;  %v2760_v2 = vsel %vm429_vm4, %v399_v34, 0.0  ;;  %v2802_v34 = vld [vmem:[%s3131_s1 + $0x8] sm:$0xf] }
 0x1f1   :  { %vm853_vm8 = vcmp.gt.f32.partialorder %v2802_v34, 0.0 }
 0x1f2   :  { %v869_v38 = vsel %vm853_vm8, 1, %v2480_v35 }
 0x1fd   :  { %v2421_v37 = vpop.eup %2420 }
 0x1fe   :  { %402 = vrot.lane.b32.xlu1 %v2421_v37, %s2482_s3 }
 0x270   :  { %v403_v39 = vpop.permute.xlu1 %402 }
 0x271   :  { %v2716_v40 = vmul.f32 %v2419_v27, %v403_v39 }
 0x273   :  { %v2720_v41 = vsel %vm429_vm4, %v2716_v40, 0.0  ;;  %vm1995_vm4 = vcmask 523264  }
 0x274   :  { %437 = vrot.lane.b32.xlu1 %v2720_v41, %s2483_s9  ;;  %v515_v42 = vrot.slane %v2720_v41, 2 }
 0x276   :  { %516 = vrot.lane.b32.xlu0 %v515_v42, %s2483_s9 }
 0x2e6   :  { %v438_v43 = vpop.permute.xlu1 %437 }
 0x2e7   :  { %2242 = vmatmul.mubr.msk.f32.vlgmr.msra.gmra.mxu1 %vm218_vm5, %v438_v43 }
 0x2e8   :  { %v517_v44 = vpop.permute.xlu0 %516  ;;  %2256 = vmatpush3.msra.mxu1 %v2569_v12  ;;  %2263 = vmatprep.mubr.msk.f32.mxu1 %vm2479_vm0, %v2478_v3 }
 0x2e9   :  { %2253 = vmatmul.mubr.msk.f32.vlgmr.msra.gmra.mxu0 %vm218_vm5, %v517_v44  ;;  %2257 = vmatprep.subr.mxu1 %v2478_v3 }
 0x2ea   :  { %2258 = vmatpush3.msra.mxu1 %v2578_v14  ;;  %2267 = vmatpush3.msra.mxu0 %v2617_v23 }
 0x2eb   :  { %2259 = vmatprep.subr.mxu1 %v2478_v3  ;;  %2268 = vmatprep.subr.mxu0 %v2478_v3 }
 0x2ec   :  { %2260 = vmatpush3.msra.mxu1 %v2587_v16  ;;  %2269 = vmatpush3.msra.mxu0 %v2630_v26 }
 0x2ed   :  { %2261 = vmatprep.subr.mxu1 %v2478_v3  ;;  %2270 = vmatprep.subr.mxu0 %v2478_v3 }
 0x2ee   :  { %2262 = vmatpush3.msra.mxu1 %v2600_v19  ;;  %2271 = vmatpush3.msra.mxu0 %v2643_v29 }
 0x2ef   :  { %2272 = vmatprep.subr.mxu0 %v2478_v3  ;;  %2274 = vmatprep.mubr.msk.f32.mxu0 %vm2479_vm0, %v2478_v3 }
 0x2f0   :  { %2273 = vmatpush3.msra.mxu0 %v2656_v32  ;;  %2277 = vmatprep.subr.mxu1 %v2478_v3 }
 0x2f1   :  { %2288 = vmatprep.subr.mxu0 %v2478_v3 }
 0x3a7   :  { %v507_v45 = vpop.f32.mrf.mxu1 }
 0x3a8   :  { %v592_v53 = vadd.f32 %v590_v52, %v507_v45 }
 0x3a9   :  { %v2243_v46 = vpop.f32.mrf.mxu1  ;;  %v586_v47 = vpop.f32.mrf.mxu0 }
 0x3aa   :  { %v593_v49 = vadd.f32 %v591_v48, %v586_v47 }
 0x3ab   :  { %v2254_v50 = vpop.f32.mrf.mxu0 }
 0x3ac   :  { %v595_v51 = vcombine.low %v593_v49, %v593_v49 }
 0x3ae   :  { %v602_v55 = vrot.slane %v595_v51, %v2705_v54 }
 0x3b0   :  { %v604_v56 = vsel %vm380_vm3, %v592_v53, %v602_v55 }
 0x3b1   :  { %2422 = vtanh.f32 %v604_v56  ;;  %v2092_v60 = vmul.f32 -1.442695, %v604_v56 }
 0x3b3   :  { %2424 = vpow2.f32 %v2092_v60 }
 0x3be   :  { %v2423_v58 = vpop.eup %2422 }
 0x3bf   :  { %614 = vrot.lane.b32.xlu0 %v2423_v58, %s2482_s3 }
 0x3c0   :  { %v2425_v61 = vpop.eup %2424 }
 0x3c1   :  { %v608_v62 = vadd.f32 1.0, %v2425_v61 }
 0x3c3   :  { %649 = vperm.xlu0 %2413, %v647_v59   ;;  %2426 = vrcp.f32 %v608_v62 }
 0x3d0   :  { %v2427_v63 = vpop.eup %2426 }
 0x3d1   :  { %v612_v4 = vmul.f32 %v2427_v63, %v2760_v2 }
 0x431   :  { %v615_v0 = vpop.permute.xlu0 %614 }
 0x432   :  { %v617_v1 = vmul.f32 %v2427_v63, %v615_v0 }
 0x434   :  { %619 = vrot.lane.b32.xlu1 %v617_v1, %s2483_s9 }
 0x43e   :  { %v650_v8 = vpop.permute.xlu0 %649 }
 0x43f   :  { %vm651_vm7 = vcmp.eq.s32.totalorder %v650_v8, 1  ;;  %v2852_v8 = vld [vmem:[%s3131_s1 + $0xc] sm:$0xf] }
 0x440   :  { %vm1075_vm10 = vcmp.gt.f32.partialorder %v2852_v8, 0.0 }
 0x4a6   :  { %v620_v5 = vpop.permute.xlu1 %619 }
 0x4a7   :  { %v622_v6 = vadd.f32 %v620_v5, %v612_v4  ;;  %v1034_v4 = vld [vmem:[#allocation2 + $0xc] sm:$0x3] }
 0x4a9   :  { %2428 = vtanh.f32 %v622_v6  ;;  %v2810_v46 = vsel %vm651_vm7, %v622_v6, %v2760_v2 }
 0x4b6   :  { %v2429_v7 = vpop.eup %2428 }
 0x4b7   :  { %625 = vrot.lane.b32.xlu1 %v2429_v7, %s2482_s3 }
 0x529   :  { %v626_v9 = vpop.permute.xlu1 %625 }
 0x52a   :  { %v2764_v10 = vmul.f32 %v2427_v63, %v626_v9  ;;  %v1035_v63 = vld [vmem:[#allocation2 + $0x12] sm:$0x3] }
 0x52c   :  { %v2769_v11 = vsel %vm651_vm7, %v2764_v10, %v2720_v41 }
 0x52d   :  { %659 = vrot.lane.b32.xlu0 %v2769_v11, %s2483_s9  ;;  %v737_v13 = vrot.slane %v2769_v11, 2 }
 0x52f   :  { %738 = vrot.lane.b32.xlu1 %v737_v13, %s2483_s9 }
 0x59f   :  { %v660_v15 = vpop.permute.xlu0 %659 }
 0x5a0   :  { %2264 = vmatmul.mubr.msk.f32.vlgmr.msra.gmra.mxu1 %vm218_vm5, %v660_v15 }
 0x5a1   :  { %v739_v17 = vpop.permute.xlu1 %738  ;;  %2278 = vmatpush3.msra.mxu1 %v2569_v12  ;;  %2285 = vmatprep.mubr.msk.f32.mxu1 %vm2479_vm0, %v2478_v3 }
 0x5a2   :  { %2275 = vmatmul.mubr.msk.f32.vlgmr.msra.gmra.mxu0 %vm218_vm5, %v739_v17  ;;  %2279 = vmatprep.subr.mxu1 %v2478_v3 }
 0x5a3   :  { %2280 = vmatpush3.msra.mxu1 %v2578_v14  ;;  %2289 = vmatpush3.msra.mxu0 %v2617_v23 }
 0x5a4   :  { %2281 = vmatprep.subr.mxu1 %v2478_v3  ;;  %2290 = vmatprep.subr.mxu0 %v2478_v3 }
 0x5a5   :  { %2282 = vmatpush3.msra.mxu1 %v2587_v16  ;;  %2291 = vmatpush3.msra.mxu0 %v2630_v26 }
 0x5a6   :  { %2283 = vmatprep.subr.mxu1 %v2478_v3  ;;  %2292 = vmatprep.subr.mxu0 %v2478_v3 }
 0x5a7   :  { %2284 = vmatpush3.msra.mxu1 %v2600_v19  ;;  %2293 = vmatpush3.msra.mxu0 %v2643_v29 }
 0x5a8   :  { %2294 = vmatprep.subr.mxu0 %v2478_v3  ;;  %2296 = vmatprep.mubr.msk.f32.mxu0 %vm2479_vm0, %v2478_v3 }
 0x5a9   :  { %2295 = vmatpush3.msra.mxu0 %v2656_v32  ;;  %2299 = vmatprep.subr.mxu1 %v2478_v3 }
 0x5aa   :  { %2310 = vmatprep.subr.mxu0 %v2478_v3 }
 0x660   :  { %v729_v18 = vpop.f32.mrf.mxu1 }
 0x661   :  { %v814_v30 = vadd.f32 %v812_v28, %v729_v18 }
 0x662   :  { %v2265_v20 = vpop.f32.mrf.mxu1  ;;  %v808_v21 = vpop.f32.mrf.mxu0 }
 0x663   :  { %v815_v24 = vadd.f32 %v813_v22, %v808_v21 }
 0x664   :  { %v2276_v25 = vpop.f32.mrf.mxu0 }
 0x665   :  { %v817_v27 = vcombine.low %v815_v24, %v815_v24 }
 0x667   :  { %v824_v31 = vrot.slane %v817_v27, %v2705_v54 }
 0x669   :  { %v826_v33 = vsel %vm380_vm3, %v814_v30, %v824_v31 }
 0x66a   :  { %2430 = vtanh.f32 %v826_v33  ;;  %v2096_v39 = vmul.f32 -1.442695, %v826_v33 }
 0x66c   :  { %2432 = vpow2.f32 %v2096_v39 }
 0x677   :  { %v2431_v37 = vpop.eup %2430 }
 0x678   :  { %836 = vrot.lane.b32.xlu1 %v2431_v37, %s2482_s3 }
 0x679   :  { %v2433_v41 = vpop.eup %2432 }
 0x67a   :  { %v830_v42 = vadd.f32 1.0, %v2433_v41 }
 0x67c   :  { %871 = vperm.xlu1 %2412, %v869_v38   ;;  %2434 = vrcp.f32 %v830_v42 }
 0x689   :  { %v2435_v43 = vpop.eup %2434 }
 0x68a   :  { %v834_v47 = vmul.f32 %v2435_v43, %v2810_v46 }
 0x6ea   :  { %v837_v44 = vpop.permute.xlu1 %836 }
 0x6eb   :  { %v839_v45 = vmul.f32 %v2435_v43, %v837_v44 }
 0x6ed   :  { %841 = vrot.lane.b32.xlu0 %v839_v45, %s2483_s9  ;;  %v1257_v45 = vld [vmem:[#allocation2 + $0xe] sm:$0x3] }
 0x6f7   :  { %v872_v51 = vpop.permute.xlu1 %871 }
 0x6f8   :  { %vm873_vm9 = vcmp.eq.s32.totalorder %v872_v51, 1 }
 0x75f   :  { %v842_v48 = vpop.permute.xlu0 %841 }
 0x760   :  { %v844_v49 = vadd.f32 %v842_v48, %v834_v47 }
 0x762   :  { %2436 = vtanh.f32 %v844_v49  ;;  %v2860_v22 = vsel %vm873_vm9, %v844_v49, %v2810_v46  ;;  %v1256_v49 = vld [vmem:[#allocation2 + $0x10] sm:$0x3] }
 0x76f   :  { %v2437_v50 = vpop.eup %2436 }
 0x770   :  { %847 = vrot.lane.b32.xlu0 %v2437_v50, %s2482_s3 }
 0x7e2   :  { %v848_v52 = vpop.permute.xlu0 %847 }
 0x7e3   :  { %v2814_v53 = vmul.f32 %v2435_v43, %v848_v52 }
 0x7e5   :  { %v2819_v55 = vsel %vm873_vm9, %v2814_v53, %v2769_v11  ;;  %v1091_v11 = vsel %vm1075_vm10, 1, %v2480_v35 }
 0x7e6   :  { %881 = vrot.lane.b32.xlu0 %v2819_v55, %s2483_s9  ;;  %v959_v56 = vrot.slane %v2819_v55, 2 }
 0x7e8   :  { %960 = vrot.lane.b32.xlu1 %v959_v56, %s2483_s9 }
 0x858   :  { %v882_v58 = vpop.permute.xlu0 %881 }
 0x859   :  { %2286 = vmatmul.mubr.msk.f32.vlgmr.msra.gmra.mxu1 %vm218_vm5, %v882_v58 }
 0x85a   :  { %v961_v59 = vpop.permute.xlu1 %960  ;;  %2300 = vmatpush3.msra.mxu1 %v2569_v12  ;;  %2307 = vmatprep.mubr.msk.f32.mxu1 %vm2479_vm0, %v2478_v3 }
 0x85b   :  { %2297 = vmatmul.mubr.msk.f32.vlgmr.msra.gmra.mxu0 %vm218_vm5, %v961_v59  ;;  %2301 = vmatprep.subr.mxu1 %v2478_v3 }
 0x85c   :  { %2302 = vmatpush3.msra.mxu1 %v2578_v14  ;;  %2311 = vmatpush3.msra.mxu0 %v2617_v23 }
 0x85d   :  { %2303 = vmatprep.subr.mxu1 %v2478_v3  ;;  %2312 = vmatprep.subr.mxu0 %v2478_v3 }
 0x85e   :  { %2304 = vmatpush3.msra.mxu1 %v2587_v16  ;;  %2313 = vmatpush3.msra.mxu0 %v2630_v26 }
 0x85f   :  { %2305 = vmatprep.subr.mxu1 %v2478_v3  ;;  %2314 = vmatprep.subr.mxu0 %v2478_v3 }
 0x860   :  { %2306 = vmatpush3.msra.mxu1 %v2600_v19  ;;  %2315 = vmatpush3.msra.mxu0 %v2643_v29 }
 0x861   :  { %2316 = vmatprep.subr.mxu0 %v2478_v3  ;;  %2318 = vmatprep.mubr.msk.f32.mxu0 %vm2479_vm0, %v2478_v3 }
 0x862   :  { %2317 = vmatpush3.msra.mxu0 %v2656_v32  ;;  %2321 = vmatprep.subr.mxu1 %v2478_v3 }
 0x863   :  { %2332 = vmatprep.subr.mxu0 %v2478_v3 }
 0x919   :  { %v951_v60 = vpop.f32.mrf.mxu1 }
 0x91a   :  { %v1036_v5 = vadd.f32 %v1034_v4, %v951_v60 }
 0x91b   :  { %v2287_v61 = vpop.f32.mrf.mxu1  ;;  %v1030_v62 = vpop.f32.mrf.mxu0 }
 0x91c   :  { %v1037_v0 = vadd.f32 %v1035_v63, %v1030_v62 }
 0x91d   :  { %v2298_v1 = vpop.f32.mrf.mxu0 }
 0x91e   :  { %v1039_v2 = vcombine.low %v1037_v0, %v1037_v0 }
 0x920   :  { %v1046_v6 = vrot.slane %v1039_v2, %v2705_v54 }
 0x922   :  { %v1048_v7 = vsel %vm380_vm3, %v1036_v5, %v1046_v6 }
 0x923   :  { %2438 = vtanh.f32 %v1048_v7  ;;  %v2100_v13 = vmul.f32 -1.442695, %v1048_v7 }
 0x925   :  { %2440 = vpow2.f32 %v2100_v13 }
 0x930   :  { %v2439_v9 = vpop.eup %2438 }
 0x931   :  { %1058 = vrot.lane.b32.xlu1 %v2439_v9, %s2482_s3 }
 0x932   :  { %v2441_v15 = vpop.eup %2440 }
 0x933   :  { %v1052_v17 = vadd.f32 1.0, %v2441_v15 }
 0x935   :  { %1093 = vperm.xlu1 %2412, %v1091_v11   ;;  %2442 = vrcp.f32 %v1052_v17 }
 0x942   :  { %v2443_v18 = vpop.eup %2442 }
 0x943   :  { %v1056_v24 = vmul.f32 %v2443_v18, %v2860_v22 }
 0x9a3   :  { %v1059_v20 = vpop.permute.xlu1 %1058 }
 0x9a4   :  { %v1061_v21 = vmul.f32 %v2443_v18, %v1059_v20 }
 0x9a6   :  { %1063 = vrot.lane.b32.xlu0 %v1061_v21, %s2483_s9  ;;  %v1478_v21 = vld [vmem:[#allocation2 + $0x14] sm:$0x3] }
 0x9b0   :  { %v1094_v30 = vpop.permute.xlu1 %1093 }
 0x9b1   :  { %vm1095_vm11 = vcmp.eq.s32.totalorder %v1094_v30, 1 }
 0xa18   :  { %v1064_v25 = vpop.permute.xlu0 %1063 }
 0xa19   :  { %v1066_v27 = vadd.f32 %v1064_v25, %v1056_v24 }
 0xa1b   :  { %2444 = vtanh.f32 %v1066_v27  ;;  %v2910_v1 = vsel %vm1095_vm11, %v1066_v27, %v2860_v22 }
 0xa28   :  { %v2445_v28 = vpop.eup %2444 }
 0xa29   :  { %1069 = vrot.lane.b32.xlu0 %v2445_v28, %s2482_s3 }
 0xa9b   :  { %v1070_v31 = vpop.permute.xlu0 %1069 }
 0xa9c   :  { %v2864_v33 = vmul.f32 %v2443_v18, %v1070_v31 }
 0xa9e   :  { %v2869_v37 = vsel %vm1095_vm11, %v2864_v33, %v2819_v55  ;;  %v2902_v55 = vld [vmem:[%s3131_s1 + $0x10] sm:$0xf] }
 0xa9f   :  { %1103 = vrot.lane.b32.xlu0 %v2869_v37, %s2483_s9  ;;  %v1181_v38 = vrot.slane %v2869_v37, 2  ;;  %vm1297_vm12 = vcmp.gt.f32.partialorder %v2902_v55, 0.0 }
 0xaa0   :  { %v1313_v58 = vsel %vm1297_vm12, 1, %v2480_v35 }
 0xaa1   :  { %1182 = vrot.lane.b32.xlu1 %v1181_v38, %s2483_s9 }
 0xb11   :  { %v1104_v39 = vpop.permute.xlu0 %1103 }
 0xb12   :  { %2308 = vmatmul.mubr.msk.f32.vlgmr.msra.gmra.mxu1 %vm218_vm5, %v1104_v39 }
 0xb13   :  { %v1183_v41 = vpop.permute.xlu1 %1182  ;;  %2322 = vmatpush3.msra.mxu1 %v2569_v12  ;;  %2329 = vmatprep.mubr.msk.f32.mxu1 %vm2479_vm0, %v2478_v3 }
 0xb14   :  { %2319 = vmatmul.mubr.msk.f32.vlgmr.msra.gmra.mxu0 %vm218_vm5, %v1183_v41  ;;  %2323 = vmatprep.subr.mxu1 %v2478_v3 }
 0xb15   :  { %2324 = vmatpush3.msra.mxu1 %v2578_v14  ;;  %2333 = vmatpush3.msra.mxu0 %v2617_v23 }
 0xb16   :  { %2325 = vmatprep.subr.mxu1 %v2478_v3  ;;  %2334 = vmatprep.subr.mxu0 %v2478_v3 }
 0xb17   :  { %2326 = vmatpush3.msra.mxu1 %v2587_v16  ;;  %2335 = vmatpush3.msra.mxu0 %v2630_v26 }
 0xb18   :  { %2327 = vmatprep.subr.mxu1 %v2478_v3  ;;  %2336 = vmatprep.subr.mxu0 %v2478_v3 }
 0xb19   :  { %2328 = vmatpush3.msra.mxu1 %v2600_v19  ;;  %2337 = vmatpush3.msra.mxu0 %v2643_v29 }
 0xb1a   :  { %2338 = vmatprep.subr.mxu0 %v2478_v3  ;;  %2340 = vmatprep.mubr.msk.f32.mxu0 %vm2479_vm0, %v2478_v3 }
 0xb1b   :  { %2339 = vmatpush3.msra.mxu0 %v2656_v32  ;;  %2343 = vmatprep.subr.mxu1 %v2478_v3 }
 0xb1c   :  { %2354 = vmatprep.subr.mxu0 %v2478_v3 }
 0xbd2   :  { %v1173_v42 = vpop.f32.mrf.mxu1 }
 0xbd3   :  { %v1258_v50 = vadd.f32 %v1256_v49, %v1173_v42 }
 0xbd4   :  { %v2309_v43 = vpop.f32.mrf.mxu1  ;;  %v1252_v44 = vpop.f32.mrf.mxu0 }
 0xbd5   :  { %v1259_v46 = vadd.f32 %v1257_v45, %v1252_v44 }
 0xbd6   :  { %v2320_v47 = vpop.f32.mrf.mxu0 }
 0xbd7   :  { %v1261_v48 = vcombine.low %v1259_v46, %v1259_v46 }
 0xbd9   :  { %v1268_v51 = vrot.slane %v1261_v48, %v2705_v54 }
 0xbdb   :  { %v1270_v52 = vsel %vm380_vm3, %v1258_v50, %v1268_v51 }
 0xbdc   :  { %2446 = vtanh.f32 %v1270_v52  ;;  %v2104_v59 = vmul.f32 -1.442695, %v1270_v52 }
 0xbde   :  { %2448 = vpow2.f32 %v2104_v59 }
 0xbe9   :  { %v2447_v56 = vpop.eup %2446 }
 0xbea   :  { %1280 = vrot.lane.b32.xlu1 %v2447_v56, %s2482_s3 }
 0xbeb   :  { %v2449_v60 = vpop.eup %2448 }
 0xbec   :  { %v1274_v61 = vadd.f32 1.0, %v2449_v60  ;;  %v1701_v60 = vld [vmem:[#allocation2 + $0x6] sm:$0x3] }
 0xbee   :  { %1315 = vperm.xlu1 %2412, %v1313_v58   ;;  %2450 = vrcp.f32 %v1274_v61 }
 0xbfb   :  { %v2451_v62 = vpop.eup %2450 }
 0xbfc   :  { %v1278_v2 = vmul.f32 %v2451_v62, %v2910_v1 }
 0xc5c   :  { %v1281_v63 = vpop.permute.xlu1 %1280 }
 0xc5d   :  { %v1283_v0 = vmul.f32 %v2451_v62, %v1281_v63 }
 0xc5f   :  { %1285 = vrot.lane.b32.xlu0 %v1283_v0, %s2483_s9  ;;  %v1700_v0 = vld [vmem:[#allocation2 + $0x18] sm:$0x3] }
 0xc69   :  { %v1316_v7 = vpop.permute.xlu1 %1315 }
 0xc6a   :  { %vm1317_vm13 = vcmp.eq.s32.totalorder %v1316_v7, 1 }
 0xcd1   :  { %v1286_v4 = vpop.permute.xlu0 %1285 }
 0xcd2   :  { %v1288_v5 = vadd.f32 %v1286_v4, %v1278_v2 }
 0xcd4   :  { %2452 = vtanh.f32 %v1288_v5  ;;  %v1319_v41 = vsel %vm1317_vm13, %v1288_v5, %v2910_v1  ;;  %v2983_v5 = vld [vmem:[%s3131_s1 + $0x18] sm:$0xf] }
 0xce1   :  { %v2453_v6 = vpop.eup %2452 }
 0xce2   :  { %1291 = vrot.lane.b32.xlu0 %v2453_v6, %s2482_s3 }
 0xd54   :  { %v1292_v9 = vpop.permute.xlu0 %1291 }
 0xd55   :  { %v2914_v11 = vmul.f32 %v2451_v62, %v1292_v9 }
 0xd57   :  { %v2919_v13 = vsel %vm1317_vm13, %v2914_v11, %v2869_v37 }
 0xd58   :  { %1325 = vrot.lane.b32.xlu0 %v2919_v13, %s2483_s9  ;;  %v1403_v15 = vrot.slane %v2919_v13, 2 }
 0xd5a   :  { %1404 = vrot.lane.b32.xlu1 %v1403_v15, %s2483_s9 }
 0xdca   :  { %v1326_v17 = vpop.permute.xlu0 %1325 }
 0xdcb   :  { %2330 = vmatmul.mubr.msk.f32.vlgmr.msra.gmra.mxu1 %vm218_vm5, %v1326_v17 }
 0xdcc   :  { %v1405_v18 = vpop.permute.xlu1 %1404  ;;  %2344 = vmatpush3.msra.mxu1 %v2569_v12  ;;  %2351 = vmatprep.mubr.msk.f32.mxu1 %vm2479_vm0, %v2478_v3 }
 0xdcd   :  { %2341 = vmatmul.mubr.msk.f32.vlgmr.msra.gmra.mxu0 %vm218_vm5, %v1405_v18  ;;  %2345 = vmatprep.subr.mxu1 %v2478_v3 }
 0xdce   :  { %2346 = vmatpush3.msra.mxu1 %v2578_v14  ;;  %2355 = vmatpush3.msra.mxu0 %v2617_v23  ;;  %v1479_v23 = vld [vmem:[#allocation2 + $0xa] sm:$0x3] }
 0xdcf   :  { %2347 = vmatprep.subr.mxu1 %v2478_v3  ;;  %2356 = vmatprep.subr.mxu0 %v2478_v3 }
 0xdd0   :  { %2348 = vmatpush3.msra.mxu1 %v2587_v16  ;;  %2357 = vmatpush3.msra.mxu0 %v2630_v26 }
 0xdd1   :  { %2349 = vmatprep.subr.mxu1 %v2478_v3  ;;  %2358 = vmatprep.subr.mxu0 %v2478_v3 }
 0xdd2   :  { %2350 = vmatpush3.msra.mxu1 %v2600_v19  ;;  %2359 = vmatpush3.msra.mxu0 %v2643_v29 }
 0xdd3   :  { %2360 = vmatprep.subr.mxu0 %v2478_v3  ;;  %2362 = vmatprep.mubr.msk.f32.mxu0 %vm2479_vm0, %v2478_v3 }
 0xdd4   :  { %2361 = vmatpush3.msra.mxu0 %v2656_v32  ;;  %2365 = vmatprep.subr.mxu1 %v2478_v3  ;;  %v2952_v32 = vld [vmem:[%s3131_s1 + $0x14] sm:$0xf] }
 0xdd5   :  { %2376 = vmatprep.subr.mxu0 %v2478_v3  ;;  %vm1519_vm14 = vcmp.gt.f32.partialorder %v2952_v32, 0.0 }
 0xdd6   :  { %v1535_v27 = vsel %vm1519_vm14, 1, %v2480_v35 }
 0xe8b   :  { %v1395_v12 = vpop.f32.mrf.mxu1 }
 0xe8c   :  { %v1480_v29 = vadd.f32 %v1478_v21, %v1395_v12  ;;  %v1845_v21 = vld [vmem:[%s3129_s5 + $0x10] sm:$0xff] }
 0xe8d   :  { %v2331_v14 = vpop.f32.mrf.mxu1  ;;  %v1474_v16 = vpop.f32.mrf.mxu0 }
 0xe8e   :  { %v1481_v26 = vadd.f32 %v1479_v23, %v1474_v16 }
 0xe8f   :  { %v2342_v20 = vpop.f32.mrf.mxu0 }
 0xe90   :  { %v1483_v19 = vcombine.low %v1481_v26, %v1481_v26  ;;  %v1766_v20 = vld [vmem:[%s3128_s4 + $0x10] sm:$0xff] }
 0xe92   :  { %v1490_v22 = vrot.slane %v1483_v19, %v2705_v54  ;;  %v1846_v19 = vld [vmem:[%s3129_s5 + $0x18] sm:$0xff] }
 0xe94   :  { %v1492_v24 = vsel %vm380_vm3, %v1480_v29, %v1490_v22  ;;  %v1765_v29 = vld [vmem:[%s3128_s4 + $0x8] sm:$0xff] }
 0xe95   :  { %2454 = vtanh.f32 %v1492_v24  ;;  %v2108_v28 = vmul.f32 -1.442695, %v1492_v24  ;;  %v1844_v22 = vld [vmem:[%s3129_s5 + $0x8] sm:$0xff]  ;;  %v1764_v24 = vld [vmem:[%s3128_s4] sm:$0xff] }
 0xe97   :  { %2456 = vpow2.f32 %v2108_v28 }
 0xea2   :  { %v2455_v25 = vpop.eup %2454 }
 0xea3   :  { %1502 = vrot.lane.b32.xlu1 %v2455_v25, %s2482_s3 }
 0xea4   :  { %v2457_v30 = vpop.eup %2456 }
 0xea5   :  { %v1496_v31 = vadd.f32 1.0, %v2457_v30 }
 0xea7   :  { %1537 = vperm.xlu1 %2412, %v1535_v27   ;;  %2458 = vrcp.f32 %v1496_v31  ;;  %v1843_v27 = vld [vmem:[%s3129_s5] sm:$0xff] }
 0xeb4   :  { %v2459_v37 = vpop.eup %2458 }
 0xeb5   :  { %v1500_v42 = vmul.f32 %v2459_v37, %v1319_v41 }
 0xf15   :  { %v1503_v38 = vpop.permute.xlu1 %1502 }
 0xf16   :  { %v1505_v39 = vmul.f32 %v2459_v37, %v1503_v38 }
 0xf18   :  { %1507 = vrot.lane.b32.xlu0 %v1505_v39, %s2483_s9 }
 0xf22   :  { %v1538_v46 = vpop.permute.xlu1 %1537 }
 0xf23   :  { %vm1539_vm15 = vcmp.eq.s32.totalorder %v1538_v46, 1 }
 0xf8a   :  { %v1508_v43 = vpop.permute.xlu0 %1507 }
 0xf8b   :  { %v1510_v44 = vadd.f32 %v1508_v43, %v1500_v42 }
 0xf8d   :  { %2460 = vtanh.f32 %v1510_v44  ;;  %v2990_v14 = vsel %vm1539_vm15, %v1510_v44, %v1319_v41  ;;  %v1923_v44 = vld [vmem:[#allocation2 + $0x2] sm:$0x3] }
 0xf9a   :  { %v2461_v45 = vpop.eup %2460 }
 0xf9b   :  { %1513 = vrot.lane.b32.xlu0 %v2461_v45, %s2482_s3 }
0x100d   :  { %v1514_v47 = vpop.permute.xlu0 %1513 }
0x100e   :  { %v2961_v48 = vmul.f32 %v2459_v37, %v1514_v47 }
0x1010   :  { %v2966_v49 = vsel %vm1539_vm15, %v2961_v48, %v2919_v13 }
0x1011   :  { %1547 = vrot.lane.b32.xlu0 %v2966_v49, %s2483_s9  ;;  %v1625_v50 = vrot.slane %v2966_v49, 2 }
0x1013   :  { %1626 = vrot.lane.b32.xlu1 %v1625_v50, %s2483_s9  ;;  %v1922_v50 = vld [vmem:[#allocation2 + $0x1c] sm:$0x3] }
0x1083   :  { %v1548_v51 = vpop.permute.xlu0 %1547 }
0x1084   :  { %2352 = vmatmul.mubr.msk.f32.vlgmr.msra.gmra.mxu1 %vm218_vm5, %v1548_v51 }
0x1085   :  { %v1627_v52 = vpop.permute.xlu1 %1626  ;;  %2373 = vmatprep.mubr.msk.f32.mxu1 %vm2479_vm0, %v2478_v3 }
0x1086   :  { %2363 = vmatmul.mubr.msk.f32.vlgmr.msra.gmra.mxu0 %vm218_vm5, %v1627_v52 }
0x1087   :  { %2384 = vmatprep.mubr.msk.f32.mxu0 %vm2479_vm0, %v2478_v3  ;;  %vm1741_vm0 = vcmp.gt.f32.partialorder %v2983_v5, 0.0  ;;  %2377 = vmatpush3.msra.mxu0 %v1846_v19  ;;  %v1981_v19 = vld [vmem:[%s3133_s6 + $0x8] sm:$0xff] }
0x1088   :  { %v1757_v7 = vsel %vm1741_vm0, 1, %v2480_v35  ;;  %v1767_v35 = vld [vmem:[%s3128_s4 + $0x18] sm:$0xff]  ;;  %2378 = vmatprep.subr.mxu0 %v2478_v3 }
0x1089   :  { %2366 = vmatpush3.msra.mxu1 %v1767_v35  ;;  %2379 = vmatpush3.msra.mxu0 %v1845_v21  ;;  %v1983_v35 = vld [vmem:[%s3133_s6 + $0x18] sm:$0xff] }
0x108a   :  { %2367 = vmatprep.subr.mxu1 %v2478_v3  ;;  %2380 = vmatprep.subr.mxu0 %v2478_v3 }
0x108b   :  { %2368 = vmatpush3.msra.mxu1 %v1766_v20  ;;  %2381 = vmatpush3.msra.mxu0 %v1844_v22  ;;  %v1982_v20 = vld [vmem:[%s3133_s6 + $0x10] sm:$0xff] }
0x108c   :  { %2369 = vmatprep.subr.mxu1 %v2478_v3  ;;  %2382 = vmatprep.subr.mxu0 %v2478_v3 }
0x108d   :  { %2370 = vmatpush3.msra.mxu1 %v1765_v29  ;;  %2383 = vmatpush3.msra.mxu0 %v1843_v27  ;;  %v1980_v29 = vld [vmem:[%s3133_s6] sm:$0xff] }
0x108e   :  { %2371 = vmatprep.subr.mxu1 %v2478_v3 }
0x108f   :  { %2372 = vmatpush3.msra.mxu1 %v1764_v24 }
0x1144   :  { %v1617_v56 = vpop.f32.mrf.mxu1 }
0x1145   :  { %v1702_v1 = vadd.f32 %v1700_v0, %v1617_v56 }
0x1146   :  { %v2353_v58 = vpop.f32.mrf.mxu1  ;;  %v1696_v59 = vpop.f32.mrf.mxu0 }
0x1147   :  { %v1703_v61 = vadd.f32 %v1701_v60, %v1696_v59 }
0x1148   :  { %v2364_v62 = vpop.f32.mrf.mxu0 }
0x1149   :  { %v1705_v63 = vcombine.low %v1703_v61, %v1703_v61 }
0x114b   :  { %v1712_v2 = vrot.slane %v1705_v63, %v2705_v54 }
0x114d   :  { %v1714_v4 = vsel %vm380_vm3, %v1702_v1, %v1712_v2 }
0x114e   :  { %2462 = vtanh.f32 %v1714_v4  ;;  %v2112_v9 = vmul.f32 -1.442695, %v1714_v4 }
0x1150   :  { %2464 = vpow2.f32 %v2112_v9 }
0x115b   :  { %v2463_v6 = vpop.eup %2462 }
0x115c   :  { %1724 = vrot.lane.b32.xlu1 %v2463_v6, %s2482_s3 }
0x115d   :  { %v2465_v13 = vpop.eup %2464 }
0x115e   :  { %v1718_v15 = vadd.f32 1.0, %v2465_v13 }
0x1160   :  { %1759 = vperm.xlu1 %2412, %v1757_v7   ;;  %2466 = vrcp.f32 %v1718_v15 }
0x116d   :  { %v2467_v17 = vpop.eup %2466 }
0x116e   :  { %v1722_v16 = vmul.f32 %v2467_v17, %v2990_v14 }
0x11ce   :  { %v1725_v18 = vpop.permute.xlu1 %1724 }
0x11cf   :  { %v1727_v12 = vmul.f32 %v2467_v17, %v1725_v18  ;;  %v1987_v18 = vld [vmem:[%s3133_s6 + $0x38] sm:$0xff] }
0x11d0   :  { %2387 = vmatprep.subr.mxu1 %v1987_v18 }
0x11d1   :  { %1729 = vrot.lane.b32.xlu0 %v1727_v12, %s2483_s9 }
0x11db   :  { %v1760_v28 = vpop.permute.xlu1 %1759 }
0x11dc   :  { %vm1761_vm1 = vcmp.eq.s32.totalorder %v1760_v28, 1 }
0x1243   :  { %v1730_v23 = vpop.permute.xlu0 %1729 }
0x1244   :  { %v2993_v26 = vadd.f32 %v1730_v23, %v1722_v16  ;;  %v1985_v23 = vld [vmem:[%s3133_s6 + $0x28] sm:$0xff] }
0x1246   :  { %2468 = vtanh.f32 %v2993_v26 }
0x1253   :  { %v2469_v25 = vpop.eup %2468 }
0x1254   :  { %1735 = vrot.lane.b32.xlu0 %v2469_v25, %s2482_s3 }
0x12c6   :  { %v1736_v30 = vpop.permute.xlu0 %1735 }
0x12c7   :  { %v1738_v31 = vmul.f32 %v2467_v17, %v1736_v30 }
0x12c9   :  { %v1762_v37 = vsel %vm1761_vm1, %v1738_v31, %v2966_v49 }
0x12ca   :  { %1769 = vrot.lane.b32.xlu0 %v1762_v37, %s2483_s9  ;;  %v1847_v38 = vrot.slane %v1762_v37, 2 }
0x12cc   :  { %1848 = vrot.lane.b32.xlu1 %v1847_v38, %s2483_s9 }
0x133c   :  { %v1770_v3 = vpop.permute.xlu0 %1769 }
0x133d   :  { %2374 = vmatmul.mubr.msk.f32.vlgmr.msra.gmra.mxu1 %vm218_vm5, %v1770_v3 }
0x133e   :  { %v1849_v39 = vpop.permute.xlu1 %1848  ;;  %2388 = vmatpush3.msra.mxu1 %v1987_v18 }
0x133f   :  { %2385 = vmatmul.mubr.msk.f32.vlgmr.msra.gmra.mxu0 %vm218_vm5, %v1849_v39 }
0x13fd   :  { %v1839_v41 = vpop.f32.mrf.mxu1 }
0x13fe   :  { %v1924_v49 = vadd.f32 %v1922_v50, %v1839_v41 }
0x13ff   :  { %v2375_v42 = vpop.f32.mrf.mxu1  ;;  %v1918_v43 = vpop.f32.mrf.mxu0 }
0x1400   :  { %v1925_v45 = vadd.f32 %v1923_v44, %v1918_v43 }
0x1401   :  { %v2386_v46 = vpop.f32.mrf.mxu0 }
0x1402   :  { %v1927_v47 = vcombine.low %v1925_v45, %v1925_v45  ;;  %v2118_v45 = vld [vmem:[%s3134_s7] ss:$0 sm:$0xff] }
0x1404   :  { %v1934_v51 = vrot.slane %v1927_v47, %v2705_v54 }
0x1406   :  { %v1936_v52 = vsel %vm380_vm3, %v1924_v49, %v1934_v51  ;;  %vm423_vm3 = vcmask 519426  }
0x1407   :  { %2470 = vtanh.f32 %v1936_v52  ;;  %v2116_v58 = vmul.f32 -1.442695, %v1936_v52 }
0x1409   :  { %2472 = vpow2.f32 %v2116_v58 }
0x1414   :  { %v2471_v56 = vpop.eup %2470 }
0x1415   :  { %1946 = vrot.lane.b32.xlu1 %v2471_v56, %s2482_s3 }
0x1416   :  { %v2473_v59 = vpop.eup %2472 }
0x1417   :  { %v1940_v60 = vadd.f32 1.0, %v2473_v59 }
0x1419   :  { %410 = vperm.xlu1 %2412, %v2697_v36   ;;  %2474 = vrcp.f32 %v1940_v60 }
0x141d   :  { %856 = vperm.xlu1 %2412, %v2802_v34   ;;  %v2117_v34 = vld [vmem:[%s3131_s1 + $0x1c] sm:$0xf] }
0x1421   :  { %1300 = vperm.xlu1 %2412, %v2902_v55  }
0x1425   :  { %1744 = vperm.xlu1 %2412, %v2983_v5  }
0x1426   :  { %v3040_v54 = vpop.eup %2474 }
0x1487   :  { %v1947_v61 = vpop.permute.xlu1 %1946 }
0x1488   :  { %v1949_v62 = vmul.f32 %v3040_v54, %v1947_v61 }
0x148a   :  { %1951 = vrot.lane.b32.xlu0 %v1949_v62, %s2483_s9 }
0x148e   :  { %634 = vperm.xlu0 %2413, %v2753_v57  }
0x1492   :  { %1078 = vperm.xlu0 %2413, %v2852_v8  }
0x1494   :  { %v411_v36 = vpop.permute.xlu1 %410 }
0x1495   :  { %v413_v55 = vmul.f32 %v411_v36, %v2716_v40  ;;  %v1763_v40 = vsel %vm1761_vm1, %v2993_v26, %v2990_v14  ;;  %v1984_v26 = vld [vmem:[%s3133_s6 + $0x20] sm:$0xff] }
0x1496   :  { %1522 = vperm.xlu0 %2413, %v2952_v32  }
0x1498   :  { %v857_v63 = vpop.permute.xlu1 %856 }
0x1499   :  { %v859_v0 = vmul.f32 %v857_v63, %v2814_v53  ;;  %v1944_v53 = vmul.f32 %v3040_v54, %v1763_v40 }
0x149a   :  { %1965 = vperm.xlu0 %2413, %v2117_v34  }
0x149c   :  { %v1301_v57 = vpop.permute.xlu1 %1300 }
0x149d   :  { %v1303_v8 = vmul.f32 %v1301_v57, %v2914_v11 }
0x149e   :  { %415 = vrot.lane.b32.xlu0 %v413_v55, %s2483_s9 }
0x14a0   :  { %v1745_v32 = vpop.permute.xlu1 %1744 }
0x14a1   :  { %v1747_v1 = vmul.f32 %v1745_v32, %v1738_v31 }
0x14a2   :  { %861 = vrot.lane.b32.xlu0 %v859_v0, %s2483_s9 }
0x14a6   :  { %420 = vrot.lane.b32.xlu0 %v413_v55, %s2482_s3 }
0x14aa   :  { %865 = vrot.lane.b32.xlu0 %v859_v0, %s2482_s3 }
0x14ae   :  { %1309 = vrot.lane.b32.xlu0 %v1303_v8, %s2482_s3 }
0x14b2   :  { %1753 = vrot.lane.b32.xlu0 %v1747_v1, %s2482_s3 }
0x14b6   :  { %1305 = vrot.lane.b32.xlu0 %v1303_v8, %s2483_s9 }
0x14ba   :  { %1749 = vrot.lane.b32.xlu0 %v1747_v1, %s2483_s9 }
0x14fc   :  { %v1952_v2 = vpop.permute.xlu0 %1951 }
0x14fd   :  { %v1954_v4 = vadd.f32 %v1952_v2, %v1944_v53 }
0x14ff   :  { %2476 = vtanh.f32 %v1954_v4 }
0x1509   :  { %v635_v11 = vpop.permute.xlu0 %634 }
0x150a   :  { %v637_v7 = vmul.f32 %v635_v11, %v2764_v10  ;;  %v1986_v10 = vld [vmem:[%s3133_s6 + $0x30] sm:$0xff] }
0x150b   :  { %2389 = vmatprep.subr.mxu1 %v1986_v10 }
0x150c   :  { %v2477_v5 = vpop.eup %2476  ;;  %2390 = vmatpush3.msra.mxu1 %v1986_v10 }
0x150d   :  { %v1079_v6 = vpop.permute.xlu0 %1078  ;;  %1957 = vrot.lane.b32.xlu1 %v2477_v5, %s2482_s3  ;;  %2391 = vmatprep.subr.mxu1 %v1985_v23 }
0x150e   :  { %v1081_v13 = vmul.f32 %v1079_v6, %v2864_v33  ;;  %2392 = vmatpush3.msra.mxu1 %v1985_v23 }
0x150f   :  { %2393 = vmatprep.subr.mxu1 %v1984_v26 }
0x1510   :  { %2394 = vmatpush3.msra.mxu1 %v1984_v26 }
0x1511   :  { %v1523_v9 = vpop.permute.xlu0 %1522  ;;  %639 = vrot.lane.b32.xlu1 %v637_v7, %s2483_s9  ;;  %2395 = vmatprep.subr.mxu1 %v1983_v35 }
0x1512   :  { %v1525_v12 = vmul.f32 %v1523_v9, %v2961_v48  ;;  %2396 = vmatpush3.msra.mxu1 %v1983_v35 }
0x1513   :  { %2397 = vmatprep.subr.mxu1 %v1982_v20 }
0x1514   :  { %2398 = vmatpush3.msra.mxu1 %v1982_v20 }
0x1515   :  { %v1966_v15 = vpop.permute.xlu0 %1965  ;;  %1083 = vrot.lane.b32.xlu1 %v1081_v13, %s2483_s9  ;;  %2399 = vmatprep.subr.mxu1 %v1981_v19 }
0x1516   :  { %2400 = vmatpush3.msra.mxu1 %v1981_v19 }
0x1517   :  { %2401 = vmatprep.subr.mxu1 %v1980_v29 }
0x1518   :  { %2402 = vmatpush3.msra.mxu1 %v1980_v29 }
0x1519   :  { %v416_v17 = vpop.permute.xlu0 %415  ;;  %643 = vrot.lane.b32.xlu1 %v637_v7, %s2482_s3 }
0x151a   :  { %419 = vst.msk [vmem:[#allocation3] sm:$0x3] %vm418_vm2, %v416_v17 }
0x151d   :  { %v862_v33 = vpop.permute.xlu0 %861  ;;  %1087 = vrot.lane.b32.xlu1 %v1081_v13, %s2482_s3 }
0x151e   :  { %864 = vst.msk [vmem:[#allocation3 + $0x4] sm:$0x3] %vm418_vm2, %v862_v33 }
0x1521   :  { %v421_v14 = vpop.permute.xlu0 %420  ;;  %1531 = vrot.lane.b32.xlu1 %v1525_v12, %s2482_s3 }
0x1522   :  { %424 = vst.msk [vmem:[#allocation3 + $0xc] sm:$0xc] %vm423_vm3, %v421_v14 }
0x1525   :  { %v866_v16 = vpop.permute.xlu0 %865  ;;  %1527 = vrot.lane.b32.xlu1 %v1525_v12, %s2483_s9 }
0x1526   :  { %868 = vst.msk [vmem:[#allocation3 + $0x8] sm:$0xc] %vm423_vm3, %v866_v16 }
0x1529   :  { %v1310_v48 = vpop.permute.xlu0 %1309 }
0x152d   :  { %v1754_v22 = vpop.permute.xlu0 %1753 }
0x1531   :  { %v1306_v28 = vpop.permute.xlu0 %1305 }
0x1535   :  { %v1750_v37 = vpop.permute.xlu0 %1749 }
0x157f   :  { %v1958_v21 = vpop.permute.xlu1 %1957 }
0x1580   :  { %v1960_v24 = vmul.f32 %v3040_v54, %v1958_v21 }
0x1582   :  { %v1968_v25 = vmul.f32 %v1966_v15, %v1960_v24 }
0x1583   :  { %v640_v27 = vpop.permute.xlu1 %639 }
0x1584   :  { %642 = vst.msk [vmem:[#allocation3 + $0x2] sm:$0x3] %vm418_vm2, %v640_v27  ;;  %1974 = vrot.lane.b32.xlu1 %v1968_v25, %s2482_s3 }
0x1585   :  { %1756 = vst.msk [vmem:[#allocation3] sm:$0xc] %vm423_vm3, %v1754_v22 }
0x1587   :  { %v1084_v30 = vpop.permute.xlu1 %1083 }
0x1588   :  { %1086 = vst.msk [vmem:[#allocation3 + $0x6] sm:$0x3] %vm418_vm2, %v1084_v30  ;;  %1970 = vrot.lane.b32.xlu1 %v1968_v25, %s2483_s9 }
0x1589   :  { %1312 = vst.msk [vmem:[#allocation3 + $0x4] sm:$0xc] %vm423_vm3, %v1310_v48 }
0x158b   :  { %v644_v31 = vpop.permute.xlu1 %643 }
0x158c   :  { %646 = vst.msk [vmem:[#allocation3 + $0xa] sm:$0xc] %vm423_vm3, %v644_v31 }
0x158d   :  { %1752 = vst.msk [vmem:[#allocation3 + $0xc] sm:$0x3] %vm418_vm2, %v1750_v37 }
0x158f   :  { %v1088_v38 = vpop.permute.xlu1 %1087 }
0x1590   :  { %1090 = vst.msk [vmem:[#allocation3 + $0x6] sm:$0xc] %vm423_vm3, %v1088_v38 }
0x1591   :  { %1308 = vst.msk [vmem:[#allocation3 + $0x8] sm:$0x3] %vm418_vm2, %v1306_v28 }
0x1593   :  { %v1532_v3 = vpop.permute.xlu1 %1531 }
0x1594   :  { %1534 = vst.msk [vmem:[#allocation3 + $0x2] sm:$0xc] %vm423_vm3, %v1532_v3 }
0x1597   :  { %v1528_v39 = vpop.permute.xlu1 %1527 }
0x1598   :  { %1530 = vst.msk [vmem:[#allocation3 + $0xa] sm:$0x3] %vm418_vm2, %v1528_v39 }
0x15f6   :  { %v1975_v41 = vpop.permute.xlu1 %1974 }
0x15f7   :  { %1977 = vst.msk [vmem:[#allocation3 - $0x2] sm:$0xc] %vm423_vm3, %v1975_v41 }
0x15fa   :  { %v1971_v42 = vpop.permute.xlu1 %1970 }
0x15fb   :  { %1973 = vst.msk [vmem:[#allocation3 + $0xe] sm:$0x3] %vm418_vm2, %v1971_v42 }
0x15fe   :  { %v1978_v43 = vld [vmem:[#allocation3] sm:$0xff] }
0x15ff   :  { %2403 = vmatprep.mubr.msk.f32.mxu1 %vm1995_vm4, %v1978_v43 }
0x1602   :  { %v1979_v44 = vld [vmem:[#allocation3 + $0x8] sm:$0xff] }
0x1603   :  { %2404 = vmatmul.mubr.msk.f32.vlgmr.msra.gmra.mxu1 %vm1995_vm4, %v1979_v44 }
0x16c3   :  { %v2405_v46 = vpop.f32.mrf.mxu1 }
0x16c4   :  { %v2074_v47 = vadd.f32 %v2405_v46, %v2118_v45 }
0x16c5   :  { %v2068_v50 = vpop.f32.mrf.mxu1 }
0x16c6   :  { %2078 = vst [vmem:[%s3135_s8 + $0x8] sm:$0xff] %v2074_v47  ;;  %v2069_v49 = vadd.f32 %v2118_v45, %v2068_v50 }
0x16c8   :  { %2077 = vst [vmem:[%s3135_s8] sm:$0xff] %v2069_v49 }

</bundles_post_ra>
